<compile_context>
chip_gen: v5e
topology: v5e:2x2
jax: 0.10.0
libtpu: 0.0.40
codegen_flags: <defaults>
</compile_context>

<pallas_src>
import functools

import jax
import jax.numpy as jnp
from jax.experimental import pallas as pl
from jax.experimental.pallas import tpu as pltpu

_LANE = 128
_NEG = -1e30  # max-pool / padded-class sentinel


def _round_up(x, m):
    return ((x + m - 1) // m) * m


def make_gcn_kernel(num_layers, n_row_blocks, blk, n_pad, p_pad, num_nodes,
                    num_graphs, a_resident, eps=1e-5):
    """Builds the fused kernel, closed over static sizes."""
    inv_n = 1.0 / float(num_nodes)  # true node count (padded H rows are 0)

    def kernel(x0_hbm, a_ref, w_ref, gamma_ref, beta_ref, pmean_ref,
               pmaskT_hbm, fcw_ref, fcb_ref,
               node_ref, graph_ref, per_layer_ref, logits_ref,
               xw_ref, ssum_ref, ssq_ref, sem):
        l = pl.program_id(0)  # layer      (sequential)
        i = pl.program_id(1)  # row stripe (arbitrary: BN is a sync point)

        # ---- very first step: stage padded input features (HBM -> the
        #      VMEM-resident `node` output window == persistent x buffer). ----
        @pl.when((l == 0) & (i == 0))
        def _stage_input():
            cp = pltpu.make_async_copy(x0_hbm, node_ref, sem)
            cp.start()
            cp.wait()

        # ---- once per layer: XW = x @ W_l (bf16 MXU, f32 accumulate),
        #      computed blockwise to bound temporaries; reset BN accumulators.
        @pl.when(i == 0)
        def _start_layer():
            ssum_ref[...] = jnp.zeros_like(ssum_ref)
            ssq_ref[...] = jnp.zeros_like(ssq_ref)

            @pl.loop(0, n_row_blocks)
            def _xw_block(j):
                off = pl.multiple_of(j * blk, blk)
                xw_ref[pl.ds(off, blk), :] = jnp.dot(
                    node_ref[pl.ds(off, blk), :], w_ref[0],
                    preferred_element_type=jnp.float32).astype(jnp.bfloat16)

        # ---- dominant product: one full-width A row stripe @ XW. ------------
        row_off = pl.multiple_of(i * blk, blk)
        if a_resident:
            a_stripe = a_ref[pl.ds(row_off, blk), :]   # resident A: slice rows
        else:
            a_stripe = a_ref[...]                      # streamed row stripe
        h = jnp.dot(a_stripe, xw_ref[...], preferred_element_type=jnp.float32)

        # Incremental BN statistics (f32, from the f32 product), then store the
        # pre-BN activations directly into the persistent x / node buffer.
        ssum_ref[...] += jnp.sum(h, axis=0, keepdims=True)
        ssq_ref[...] += jnp.sum(h * h, axis=0, keepdims=True)
        node_ref[pl.ds(row_off, blk), :] = h.astype(jnp.bfloat16)

        # ---- end of layer: fused BatchNorm + ReLU in place + mean pool. -----
        @pl.when(i == n_row_blocks - 1)
        def _finish_layer():
            mean = ssum_ref[...] * inv_n
            # One-pass variance, clamped at 0 to guard f32 cancellation.
            var = jnp.maximum(ssq_ref[...] * inv_n - mean * mean, 0.0)
            gamma = gamma_ref[0, :, :]
            beta = beta_ref[0, :, :]
            scale = gamma * jax.lax.rsqrt(var + eps)
            shift = beta - mean * scale
            # GCNConv bias omitted: cancelled exactly by the BN mean
            # subtraction.  dropout(p=0) == identity.

            @pl.loop(0, n_row_blocks)
            def _bn_block(j):
                off = pl.multiple_of(j * blk, blk)
                hb = node_ref[pl.ds(off, blk), :].astype(jnp.float32)
                xb = jnp.maximum(hb * scale + shift, 0.0)
                node_ref[pl.ds(off, blk), :] = xb.astype(jnp.bfloat16)

            # global_mean_pool for this layer: one [G,N]x[N,P] bf16 MXU pass.
            per_layer_ref[0, :, :] = jnp.dot(
                pmean_ref[...], node_ref[...],
                preferred_element_type=jnp.float32)

        # ---- final step: masked max-pool, fc, log_softmax. -------------------
        @pl.when((l == num_layers - 1) & (i == n_row_blocks - 1))
        def _head():
            def pooled(mask_buf):
                cp = pltpu.make_async_copy(pmaskT_hbm, mask_buf, sem)
                cp.start()
                cp.wait()

                def blk_max(j, carry):
                    off = pl.multiple_of(j * blk, blk)
                    xb = node_ref[pl.ds(off, blk), :].astype(jnp.float32)
                    mb = mask_buf[pl.ds(off, blk), :]
                    rows = [
                        jnp.max(jnp.where(mb[:, g:g + 1] > 0, xb, _NEG),
                                axis=0, keepdims=True)
                        for g in range(num_graphs)]      # static, G is small
                    return jnp.maximum(carry, jnp.concatenate(rows, axis=0))

                gx = jax.lax.fori_loop(
                    0, n_row_blocks, blk_max,
                    jnp.full((num_graphs, p_pad), _NEG, jnp.float32))
                graph_ref[...] = gx
                out = jnp.dot(gx, fcw_ref[...],
                              preferred_element_type=jnp.float32) + fcb_ref[...]
                mx = jnp.max(out, axis=-1, keepdims=True)  # padded cols = -1e30
                z = out - mx
                lse = jnp.log(jnp.sum(jnp.exp(z), axis=-1, keepdims=True))
                logits_ref[...] = z - lse

            # Max-pool mask lives in HBM; it is pulled into a scoped VMEM
            # buffer only for this single (final) grid step.
            pl.run_scoped(pooled, pltpu.VMEM((n_pad, num_graphs), jnp.float32))

    return kernel


@functools.partial(jax.jit, static_argnames=("num_layers", "num_graphs", "dim",
                                             "num_classes"))
def gcn_forward(x, edge_index, batch, flat_params, *, num_layers, num_graphs,
                dim, num_classes):
    N, F = x.shape
    P = max(_round_up(F, _LANE), _round_up(dim, _LANE))   # padded feature width
    C_pad = _round_up(num_classes, _LANE)
    N_pad = _round_up(N, _LANE)
    blk = min(512, N_pad)               # full-width row stripe height
    N_pad = _round_up(N_pad, blk)       # extra rows/cols of A are zero
    n_row_blocks = N_pad // blk
    # Keep the whole normalized adjacency VMEM-resident across layers when it
    # fits comfortably; otherwise stream full-width row stripes.
    a_resident = (N_pad * N_pad * 2) <= (16 << 20)
    stripe_bytes = blk * N_pad * 2
    a_nbuf = 1 if a_resident else (3 if 3 * stripe_bytes <= (18 << 20) else 2)

    # ---- glue: dense normalized adjacency D^{-1/2}(A+I)D^{-1/2} (bf16). -----
    A = jnp.zeros((N, N), jnp.float32)
    A = A.at[edge_index[1], edge_index[0]].add(1.0)       # message src -> dst
    A = A + jnp.eye(N, dtype=jnp.float32)                 # self loops
    deg = jnp.sum(A, axis=1)
    dinv = jax.lax.rsqrt(deg)
    a_norm = dinv[:, None] * A * dinv[None, :]
    a_norm = jnp.pad(a_norm, ((0, N_pad - N), (0, N_pad - N))
                     ).astype(jnp.bfloat16)

    # ---- glue: pooling operators. --------------------------------------------
    onehot = (batch[None, :] == jnp.arange(num_graphs)[:, None]
              ).astype(jnp.float32)                       # [G, N]
    counts = jnp.maximum(jnp.sum(onehot, axis=1, keepdims=True), 1.0)
    pmean = jnp.pad(onehot / counts,
                    ((0, 0), (0, N_pad - N))).astype(jnp.bfloat16)  # [G, N_pad]
    pmaskT = jnp.pad(onehot.T, ((0, N_pad - N), (0, 0)))  # [N_pad, G] f32 (HBM)

    # ---- glue: pad / stack parameters. ----------------------------------------
    ws, gammas, betas = [], [], []
    for li in range(num_layers):
        w, _b, gamma, beta = flat_params[4 * li:4 * li + 4]
        # GCNConv bias `_b` not passed: cancelled by training-mode BN.
        ws.append(jnp.pad(w, ((0, P - w.shape[0]), (0, P - w.shape[1]))))
        gammas.append(jnp.pad(gamma, ((0, 0), (0, P - gamma.shape[1]))))
        betas.append(jnp.pad(beta, ((0, 0), (0, P - beta.shape[1]))))
    w_all = jnp.stack(ws).astype(jnp.bfloat16)            # [L, P, P]
    gamma_all = jnp.stack(gammas)                         # [L, 1, P] f32
    beta_all = jnp.stack(betas)                           # [L, 1, P] f32
    fc_w = flat_params[4 * num_layers]
    fc_b = flat_params[4 * num_layers + 1]
    fc_w = jnp.pad(fc_w, ((0, P - fc_w.shape[0]), (0, C_pad - num_classes)))
    # Padded class columns get a -1e30 bias so they vanish in log_softmax.
    fc_b = jnp.pad(fc_b, ((0, 0), (0, C_pad - num_classes)),
                   constant_values=_NEG)

    x0 = jnp.pad(x, ((0, N_pad - N), (0, P - F))).astype(jnp.bfloat16)

    kernel = make_gcn_kernel(num_layers, n_row_blocks, blk, N_pad, P, N,
                             num_graphs, a_resident)

    out_shapes = (
        jax.ShapeDtypeStruct((N_pad, P), jnp.bfloat16),                 # node/x
        jax.ShapeDtypeStruct((num_graphs, P), jnp.float32),             # max pool
        jax.ShapeDtypeStruct((num_layers, num_graphs, P), jnp.float32), # per layer
        jax.ShapeDtypeStruct((num_graphs, C_pad), jnp.float32),         # log-probs
    )

    if a_resident:
        a_spec = pl.BlockSpec((N_pad, N_pad), lambda l, i: (0, 0))
    else:
        a_spec = pl.BlockSpec((blk, N_pad), lambda l, i: (i, 0),
                              pipeline_mode=pl.Buffered(a_nbuf))

    in_specs = [
        pl.BlockSpec(memory_space=pl.ANY),                              # x0 (HBM)
        a_spec,                                                         # A_norm
        pl.BlockSpec((1, P, P), lambda l, i: (l, 0, 0)),                # W_l
        pl.BlockSpec((1, 1, P), lambda l, i: (l, 0, 0)),                # gamma_l
        pl.BlockSpec((1, 1, P), lambda l, i: (l, 0, 0)),                # beta_l
        pl.BlockSpec((num_graphs, N_pad), lambda l, i: (0, 0)),         # pmean
        pl.BlockSpec(memory_space=pl.ANY),                              # mask (HBM)
        pl.BlockSpec((P, C_pad), lambda l, i: (0, 0)),                  # fc_w
        pl.BlockSpec((1, C_pad), lambda l, i: (0, 0)),                  # fc_b
    ]
    out_specs = [
        pl.BlockSpec((N_pad, P), lambda l, i: (0, 0)),                  # node/x
        pl.BlockSpec((num_graphs, P), lambda l, i: (0, 0)),
        pl.BlockSpec((1, num_graphs, P), lambda l, i: (l, 0, 0)),
        pl.BlockSpec((num_graphs, C_pad), lambda l, i: (0, 0)),
    ]
    scratch_shapes = [
        pltpu.VMEM((N_pad, P), jnp.bfloat16),       # XW for the current layer
        pltpu.VMEM((1, P), jnp.float32),            # BN ssum accumulator
        pltpu.VMEM((1, P), jnp.float32),            # BN ssq accumulator
        pltpu.SemaphoreType.DMA(()),                # x0 / mask staging DMA
    ]

    # ---- generation-aware scoped-VMEM budget. --------------------------------
    a_vmem = (2 * N_pad * N_pad * 2) if a_resident else (a_nbuf * stripe_bytes)
    est = (a_vmem
           + 2 * N_pad * P * 2            # node/x output window (bf16)
           + N_pad * P * 2                # XW scratch
           + N_pad * _LANE * 4            # scoped max-pool mask (lane-padded)
           + 2 * P * P * 2                # W block
           + 2 * 8 * N_pad * 2            # pmean (sublane-padded bf16)
           + 2 * P * C_pad * 4            # fc_w
           + 6 * blk * P * 4              # elementwise temps in block loops
           + (2 << 20))                   # gamma/beta/small outputs/headroom
    try:
        vmem_cap = int(pltpu.get_tpu_info().vmem_capacity_bytes)
    except Exception:                     # unknown generation -> assume 64 MiB
        vmem_cap = 64 << 20
    vmem_limit = min(max(int(est * 1.3), 32 << 20), int(vmem_cap * 0.85))

    node_p, graph_p, per_layer_p, logits_p = pl.pallas_call(
        kernel,
        out_shape=out_shapes,
        grid_spec=pltpu.PrefetchScalarGridSpec(
            num_scalar_prefetch=0,
            grid=(num_layers, n_row_blocks),
            in_specs=in_specs,
            out_specs=out_specs,
            scratch_shapes=scratch_shapes),
        compiler_params=pltpu.CompilerParams(
            # Both axes "arbitrary": BatchNorm's global statistics make each
            # layer a cross-row-block sync point through persistent VMEM.
            dimension_semantics=("arbitrary", "arbitrary"),
            vmem_limit_bytes=vmem_limit),
    )(x0, a_norm, w_all, gamma_all, beta_all, pmean, pmaskT, fc_w, fc_b)

    return (node_p[:N, :dim].astype(jnp.float32), graph_p[:, :dim],
            per_layer_p[:, :, :dim], logits_p[:, :num_classes])


def init_params(key, num_features, dim, num_classes, num_layers):
    """Deterministic synthetic parameters matching the module's shapes."""
    params = []
    in_dim = num_features
    for _ in range(num_layers):
        key, k1, k2 = jax.random.split(key, 3)
        w = jax.random.normal(k1, (in_dim, dim), jnp.float32) * 0.1
        b = jax.random.normal(k2, (1, dim), jnp.float32) * 0.01
        gamma = jnp.ones((1, dim), jnp.float32)
        beta = jnp.zeros((1, dim), jnp.float32)
        params.extend([w, b, gamma, beta])
        in_dim = dim
    key, k1, k2 = jax.random.split(key, 3)
    fc_w = jax.random.normal(k1, (dim, num_classes), jnp.float32) * 0.1
    fc_b = jax.random.normal(k2, (1, num_classes), jnp.float32) * 0.01
    params.extend([fc_w, fc_b])
    return params


if __name__ == "__main__":
    num_features = 8
    dim = 20
    num_classes = 2
    num_layers = 3
    num_graphs = 3
    nodes_per_graph = 4
    N = num_graphs * nodes_per_graph

    key = jax.random.PRNGKey(0)
    key, kx = jax.random.split(key)
    x = jax.random.normal(kx, (N, num_features), jnp.float32)

    # batch assignment: 4 nodes per graph (contiguous)
    batch = jnp.repeat(jnp.arange(num_graphs, dtype=jnp.int32), nodes_per_graph)

    # symmetric ring edges within each graph (no self loops)
    src, dst = [], []
    for g in range(num_graphs):
        base = g * nodes_per_graph
        for j in range(nodes_per_graph):
            a = base + j
            b = base + (j + 1) % nodes_per_graph
            src += [a, b]
            dst += [b, a]
    edge_index = jnp.array([src, dst], dtype=jnp.int32)   # [2, 24]

    flat_params = init_params(key, num_features, dim, num_classes, num_layers)

    node_emb, graph_emb, per_layer, logits = gcn_forward(
        x, edge_index, batch, flat_params,
        num_layers=num_layers, num_graphs=num_graphs, dim=dim,
        num_classes=num_classes)
    jax.block_until_ready((node_emb, graph_emb, per_layer, logits))

    assert node_emb.shape == (N, dim)
    assert graph_emb.shape == (num_graphs, dim)
    assert per_layer.shape == (num_layers, num_graphs, dim)
    assert logits.shape == (num_graphs, num_classes)
    # log_softmax rows should (approximately) exponentiate-sum to 1
    assert jnp.allclose(jnp.sum(jnp.exp(logits), axis=-1), 1.0, atol=1e-4)
    assert bool(jnp.all(jnp.isfinite(node_emb)))
    assert bool(jnp.all(jnp.isfinite(graph_emb)))

    print("KERNEL_OK")
</pallas_src>

<mosaic_0001>
module attributes {stable_mosaic.version = 11 : i64} {
  func.func @kernel(%arg0: i32, %arg1: i32, %arg2: memref<128x128xbf16, #tpu.memory_space<any>>, %arg3: memref<128x128xbf16, #tpu.memory_space<vmem>>, %arg4: memref<1x128x128xbf16, #tpu.memory_space<vmem>>, %arg5: memref<1x1x128xf32, #tpu.memory_space<vmem>>, %arg6: memref<1x1x128xf32, #tpu.memory_space<vmem>>, %arg7: memref<3x128xbf16, #tpu.memory_space<vmem>>, %arg8: memref<128x3xf32, #tpu.memory_space<any>>, %arg9: memref<128x128xf32, #tpu.memory_space<vmem>>, %arg10: memref<1x128xf32, #tpu.memory_space<vmem>>, %arg11: memref<128x128xbf16, #tpu.memory_space<vmem>>, %arg12: memref<3x128xf32, #tpu.memory_space<vmem>>, %arg13: memref<1x3x128xf32, #tpu.memory_space<vmem>>, %arg14: memref<3x128xf32, #tpu.memory_space<vmem>>, %arg15: memref<128x128xbf16, #tpu.memory_space<vmem>>, %arg16: memref<1x128xf32, #tpu.memory_space<vmem>>, %arg17: memref<1x128xf32, #tpu.memory_space<vmem>>, %arg18: memref<!tpu.dma_semaphore, #tpu.memory_space<semaphore_mem>>) attributes {dimension_semantics = [#tpu.dimension_semantics<arbitrary>, #tpu.dimension_semantics<arbitrary>], iteration_bounds = array<i64: 3, 1>, scalar_prefetch = 0 : i64, scratch_operands = 4 : i64, tpu.core_type = #tpu.core_type<tc>, window_params = [{}, {pipeline_mode = #tpu.pipeline_mode<synchronous>, transform_indices = @transform_1, window_bounds = array<i64: 128, 128>}, {transform_indices = @transform_2, window_bounds = array<i64: 1, 128, 128>}, {transform_indices = @transform_3, window_bounds = array<i64: 1, 1, 128>}, {transform_indices = @transform_4, window_bounds = array<i64: 1, 1, 128>}, {pipeline_mode = #tpu.pipeline_mode<synchronous>, transform_indices = @transform_5, window_bounds = array<i64: 3, 128>}, {}, {pipeline_mode = #tpu.pipeline_mode<synchronous>, transform_indices = @transform_7, window_bounds = array<i64: 128, 128>}, {pipeline_mode = #tpu.pipeline_mode<synchronous>, transform_indices = @transform_8, window_bounds = array<i64: 1, 128>}, {pipeline_mode = #tpu.pipeline_mode<synchronous>, transform_indices = @transform_9, window_bounds = array<i64: 128, 128>}, {pipeline_mode = #tpu.pipeline_mode<synchronous>, transform_indices = @transform_10, window_bounds = array<i64: 3, 128>}, {transform_indices = @transform_11, window_bounds = array<i64: 1, 3, 128>}, {pipeline_mode = #tpu.pipeline_mode<synchronous>, transform_indices = @transform_12, window_bounds = array<i64: 3, 128>}]} {
    %c0_i32 = arith.constant 0 : i32
    %0 = arith.cmpi eq, %arg0, %c0_i32 : i32
    %c0_i32_0 = arith.constant 0 : i32
    %1 = arith.cmpi eq, %arg1, %c0_i32_0 : i32
    %2 = arith.andi %0, %1 : i1
    %3 = arith.extui %2 : i1 to i32
    %c0_i32_1 = arith.constant 0 : i32
    %4 = arith.cmpi ne, %3, %c0_i32_1 : i32
    scf.if %4 {
      tpu.enqueue_dma source(%arg2 : memref<128x128xbf16, #tpu.memory_space<any>>) target(%arg11 : memref<128x128xbf16, #tpu.memory_space<vmem>>) target_semaphore(%arg18 : memref<!tpu.dma_semaphore, #tpu.memory_space<semaphore_mem>>)
      tpu.wait_dma2 semaphore(%arg18 : memref<!tpu.dma_semaphore, #tpu.memory_space<semaphore_mem>>) src(%arg2 : memref<128x128xbf16, #tpu.memory_space<any>>) dst(%arg11 : memref<128x128xbf16, #tpu.memory_space<vmem>>)
    } else {
    }
    %c0_i32_2 = arith.constant 0 : i32
    %5 = arith.cmpi eq, %arg1, %c0_i32_2 : i32
    %6 = arith.extui %5 : i1 to i32
    %c0_i32_3 = arith.constant 0 : i32
    %7 = arith.cmpi ne, %6, %c0_i32_3 : i32
    scf.if %7 {
      %cst_21 = arith.constant 0.000000e+00 : f32
      %36 = vector.broadcast %cst_21 : f32 to vector<1x128xf32>
      %c0_22 = arith.constant 0 : index
      %c0_23 = arith.constant 0 : index
      %37 = vector.load %arg16[%c0_22, %c0_23] : memref<1x128xf32, #tpu.memory_space<vmem>>, vector<1x128xf32>
      tpu.vector_store %arg16[%c0_22, %c0_23], %36 {strides = array<i32>} : memref<1x128xf32, #tpu.memory_space<vmem>>, vector<1x128xf32>,
      %cst_24 = arith.constant 0.000000e+00 : f32
      %38 = vector.broadcast %cst_24 : f32 to vector<1x128xf32>
      %c0_25 = arith.constant 0 : index
      %c0_26 = arith.constant 0 : index
      %39 = vector.load %arg17[%c0_25, %c0_26] : memref<1x128xf32, #tpu.memory_space<vmem>>, vector<1x128xf32>
      tpu.vector_store %arg17[%c0_25, %c0_26], %38 {strides = array<i32>} : memref<1x128xf32, #tpu.memory_space<vmem>>, vector<1x128xf32>,
      %c0_i32_27 = arith.constant 0 : i32
      %c1_i32 = arith.constant 1 : i32
      %40 = arith.muli %c0_i32_27, %c1_i32 : i32
      %c0_i32_28 = arith.constant 0 : i32
      %41 = arith.addi %c0_i32_28, %40 : i32
      %c128_i32_29 = arith.constant 128 : i32
      %42 = arith.muli %41, %c128_i32_29 : i32
      %43 = tpu.assume_multiple %42, 128 : i32
      %44 = arith.index_cast %43 : i32 to index
      %c0_30 = arith.constant 0 : index
      %45 = vector.load %arg11[%44, %c0_30] : memref<128x128xbf16, #tpu.memory_space<vmem>>, vector<128x128xbf16>
      %c0_31 = arith.constant 0 : index
      %c0_32 = arith.constant 0 : index
      %c0_33 = arith.constant 0 : index
      %46 = vector.load %arg4[%c0_31, %c0_32, %c0_33] : memref<1x128x128xbf16, #tpu.memory_space<vmem>>, vector<1x128x128xbf16>
      %47 = vector.shape_cast %46 : vector<1x128x128xbf16> to vector<128x128xbf16>
      %cst_34 = arith.constant dense<0.000000e+00> : vector<128x128xf32>
      %48 = tpu.matmul %45, %47, %cst_34 {dimension_numbers = #tpu.dot_dimension_numbers<[1], [0], [0], [1], [0, 0, 1, 1], [], []>} : vector<128x128xbf16>, vector<128x128xbf16>, vector<128x128xf32> -> vector<128x128xf32>
      %49 = arith.truncf %48 : vector<128x128xf32> to vector<128x128xbf16>
      %50 = arith.index_cast %43 : i32 to index
      %c0_35 = arith.constant 0 : index
      %51 = vector.load %arg15[%50, %c0_35] : memref<128x128xbf16, #tpu.memory_space<vmem>>, vector<128x128xbf16>
      tpu.vector_store %arg15[%50, %c0_35], %49 {strides = array<i32>} : memref<128x128xbf16, #tpu.memory_space<vmem>>, vector<128x128xbf16>,
      %c1_i32_36 = arith.constant 1 : i32
    } else {
    }
    %c128_i32 = arith.constant 128 : i32
    %8 = arith.muli %arg1, %c128_i32 : i32
    %9 = tpu.assume_multiple %8, 128 : i32
    %10 = arith.index_cast %9 : i32 to index
    %c0 = arith.constant 0 : index
    %11 = vector.load %arg3[%10, %c0] : memref<128x128xbf16, #tpu.memory_space<vmem>>, vector<128x128xbf16>
    %c0_4 = arith.constant 0 : index
    %c0_5 = arith.constant 0 : index
    %12 = vector.load %arg15[%c0_4, %c0_5] : memref<128x128xbf16, #tpu.memory_space<vmem>>, vector<128x128xbf16>
    %cst = arith.constant dense<0.000000e+00> : vector<128x128xf32>
    %13 = tpu.matmul %11, %12, %cst {dimension_numbers = #tpu.dot_dimension_numbers<[1], [0], [0], [1], [0, 0, 1, 1], [], []>} : vector<128x128xbf16>, vector<128x128xbf16>, vector<128x128xf32> -> vector<128x128xf32>
    %c0_6 = arith.constant 0 : index
    %c0_7 = arith.constant 0 : index
    %14 = vector.load %arg16[%c0_6, %c0_7] : memref<1x128xf32, #tpu.memory_space<vmem>>, vector<1x128xf32>
    %cst_8 = arith.constant dense<0.000000e+00> : vector<128xf32>
    %15 = vector.multi_reduction <add>, %13, %cst_8 [0] : vector<128x128xf32> to vector<128xf32>
    %16 = vector.shape_cast %15 : vector<128xf32> to vector<1x128xf32>
    %17 = arith.addf %14, %16 : vector<1x128xf32>
    %c0_9 = arith.constant 0 : index
    %c0_10 = arith.constant 0 : index
    %18 = vector.load %arg16[%c0_9, %c0_10] : memref<1x128xf32, #tpu.memory_space<vmem>>, vector<1x128xf32>
    tpu.vector_store %arg16[%c0_9, %c0_10], %17 {strides = array<i32>} : memref<1x128xf32, #tpu.memory_space<vmem>>, vector<1x128xf32>,
    %c0_11 = arith.constant 0 : index
    %c0_12 = arith.constant 0 : index
    %19 = vector.load %arg17[%c0_11, %c0_12] : memref<1x128xf32, #tpu.memory_space<vmem>>, vector<1x128xf32>
    %20 = arith.mulf %13, %13 : vector<128x128xf32>
    %cst_13 = arith.constant dense<0.000000e+00> : vector<128xf32>
    %21 = vector.multi_reduction <add>, %20, %cst_13 [0] : vector<128x128xf32> to vector<128xf32>
    %22 = vector.shape_cast %21 : vector<128xf32> to vector<1x128xf32>
    %23 = arith.addf %19, %22 : vector<1x128xf32>
    %c0_14 = arith.constant 0 : index
    %c0_15 = arith.constant 0 : index
    %24 = vector.load %arg17[%c0_14, %c0_15] : memref<1x128xf32, #tpu.memory_space<vmem>>, vector<1x128xf32>
    tpu.vector_store %arg17[%c0_14, %c0_15], %23 {strides = array<i32>} : memref<1x128xf32, #tpu.memory_space<vmem>>, vector<1x128xf32>,
    %25 = arith.truncf %13 : vector<128x128xf32> to vector<128x128xbf16>
    %26 = arith.index_cast %9 : i32 to index
    %c0_16 = arith.constant 0 : index
    %27 = vector.load %arg11[%26, %c0_16] : memref<128x128xbf16, #tpu.memory_space<vmem>>, vector<128x128xbf16>
    tpu.vector_store %arg11[%26, %c0_16], %25 {strides = array<i32>} : memref<128x128xbf16, #tpu.memory_space<vmem>>, vector<128x128xbf16>,
    %c0_i32_17 = arith.constant 0 : i32
    %28 = arith.cmpi eq, %arg1, %c0_i32_17 : i32
    %29 = arith.extui %28 : i1 to i32
    %c0_i32_18 = arith.constant 0 : i32
    %30 = arith.cmpi ne, %29, %c0_i32_18 : i32
    scf.if %30 {
      %c0_21 = arith.constant 0 : index
      %c0_22 = arith.constant 0 : index
      %36 = vector.load %arg16[%c0_21, %c0_22] : memref<1x128xf32, #tpu.memory_space<vmem>>, vector<1x128xf32>
      %cst_23 = arith.constant 0.0833333358 : f32
      %37 = vector.broadcast %cst_23 : f32 to vector<1x128xf32>
      %38 = arith.mulf %36, %37 : vector<1x128xf32>
      %c0_24 = arith.constant 0 : index
      %c0_25 = arith.constant 0 : index
      %39 = vector.load %arg17[%c0_24, %c0_25] : memref<1x128xf32, #tpu.memory_space<vmem>>, vector<1x128xf32>
      %cst_26 = arith.constant 0.0833333358 : f32
      %40 = vector.broadcast %cst_26 : f32 to vector<1x128xf32>
      %41 = arith.mulf %39, %40 : vector<1x128xf32>
      %42 = arith.mulf %38, %38 : vector<1x128xf32>
      %43 = arith.subf %41, %42 : vector<1x128xf32>
      %cst_27 = arith.constant 0.000000e+00 : f32
      %44 = vector.broadcast %cst_27 : f32 to vector<1x128xf32>
      %45 = arith.maximumf %43, %44 : vector<1x128xf32>
      %c0_28 = arith.constant 0 : index
      %c0_29 = arith.constant 0 : index
      %c0_30 = arith.constant 0 : index
      %46 = vector.load %arg5[%c0_28, %c0_29, %c0_30] : memref<1x1x128xf32, #tpu.memory_space<vmem>>, vector<1x1x128xf32>
      %47 = vector.shape_cast %46 : vector<1x1x128xf32> to vector<1x128xf32>
      %c0_31 = arith.constant 0 : index
      %c0_32 = arith.constant 0 : index
      %c0_33 = arith.constant 0 : index
      %48 = vector.load %arg6[%c0_31, %c0_32, %c0_33] : memref<1x1x128xf32, #tpu.memory_space<vmem>>, vector<1x1x128xf32>
      %49 = vector.shape_cast %48 : vector<1x1x128xf32> to vector<1x128xf32>
      %cst_34 = arith.constant 9.99999974E-6 : f32
      %50 = vector.broadcast %cst_34 : f32 to vector<1x128xf32>
      %51 = arith.addf %45, %50 : vector<1x128xf32>
      %52 = math.rsqrt %51 : vector<1x128xf32>
      %53 = arith.mulf %47, %52 : vector<1x128xf32>
      %54 = arith.mulf %38, %53 : vector<1x128xf32>
      %55 = arith.subf %49, %54 : vector<1x128xf32>
      %c0_i32_35 = arith.constant 0 : i32
      %c1_i32 = arith.constant 1 : i32
      %56 = arith.muli %c0_i32_35, %c1_i32 : i32
      %c0_i32_36 = arith.constant 0 : i32
      %57 = arith.addi %c0_i32_36, %56 : i32
      %c128_i32_37 = arith.constant 128 : i32
      %58 = arith.muli %57, %c128_i32_37 : i32
      %59 = tpu.assume_multiple %58, 128 : i32
      %60 = arith.index_cast %59 : i32 to index
      %c0_38 = arith.constant 0 : index
      %61 = vector.load %arg11[%60, %c0_38] : memref<128x128xbf16, #tpu.memory_space<vmem>>, vector<128x128xbf16>
      %62 = arith.extf %61 : vector<128x128xbf16> to vector<128x128xf32>
      %63 = vector.broadcast %53 : vector<1x128xf32> to vector<128x128xf32>
      %64 = arith.mulf %62, %63 : vector<128x128xf32>
      %65 = vector.broadcast %55 : vector<1x128xf32> to vector<128x128xf32>
      %66 = arith.addf %64, %65 : vector<128x128xf32>
      %cst_39 = arith.constant 0.000000e+00 : f32
      %67 = vector.broadcast %cst_39 : f32 to vector<128x128xf32>
      %68 = arith.maximumf %66, %67 : vector<128x128xf32>
      %69 = arith.truncf %68 : vector<128x128xf32> to vector<128x128xbf16>
      %70 = arith.index_cast %59 : i32 to index
      %c0_40 = arith.constant 0 : index
      %71 = vector.load %arg11[%70, %c0_40] : memref<128x128xbf16, #tpu.memory_space<vmem>>, vector<128x128xbf16>
      tpu.vector_store %arg11[%70, %c0_40], %69 {strides = array<i32>} : memref<128x128xbf16, #tpu.memory_space<vmem>>, vector<128x128xbf16>,
      %c1_i32_41 = arith.constant 1 : i32
      %c0_42 = arith.constant 0 : index
      %c0_43 = arith.constant 0 : index
      %72 = vector.load %arg7[%c0_42, %c0_43] : memref<3x128xbf16, #tpu.memory_space<vmem>>, vector<3x128xbf16>
      %c0_44 = arith.constant 0 : index
      %c0_45 = arith.constant 0 : index
      %73 = vector.load %arg11[%c0_44, %c0_45] : memref<128x128xbf16, #tpu.memory_space<vmem>>, vector<128x128xbf16>
      %cst_46 = arith.constant dense<0.000000e+00> : vector<3x128xf32>
      %74 = tpu.matmul %72, %73, %cst_46 {dimension_numbers = #tpu.dot_dimension_numbers<[1], [0], [0], [1], [0, 0, 1, 1], [], []>} : vector<3x128xbf16>, vector<128x128xbf16>, vector<3x128xf32> -> vector<3x128xf32>
      %c0_47 = arith.constant 0 : index
      %c0_48 = arith.constant 0 : index
      %c0_49 = arith.constant 0 : index
      %75 = vector.load %arg13[%c0_47, %c0_48, %c0_49] : memref<1x3x128xf32, #tpu.memory_space<vmem>>, vector<1x3x128xf32>
      %76 = vector.shape_cast %75 : vector<1x3x128xf32> to vector<3x128xf32>
      %77 = vector.shape_cast %74 : vector<3x128xf32> to vector<1x3x128xf32>
      tpu.vector_store %arg13[%c0_47, %c0_48, %c0_49], %77 {strides = array<i32>} : memref<1x3x128xf32, #tpu.memory_space<vmem>>, vector<1x3x128xf32>,
    } else {
    }
    %c2_i32 = arith.constant 2 : i32
    %31 = arith.cmpi eq, %arg0, %c2_i32 : i32
    %c0_i32_19 = arith.constant 0 : i32
    %32 = arith.cmpi eq, %arg1, %c0_i32_19 : i32
    %33 = arith.andi %31, %32 : i1
    %34 = arith.extui %33 : i1 to i32
    %c0_i32_20 = arith.constant 0 : i32
    %35 = arith.cmpi ne, %34, %c0_i32_20 : i32
    scf.if %35 {
      "tpu.region"() ({
        %alloca = memref.alloca() : memref<128x3xf32, #tpu.memory_space<vmem>>
        tpu.enqueue_dma source(%arg8 : memref<128x3xf32, #tpu.memory_space<any>>) target(%alloca : memref<128x3xf32, #tpu.memory_space<vmem>>) target_semaphore(%arg18 : memref<!tpu.dma_semaphore, #tpu.memory_space<semaphore_mem>>)
        tpu.wait_dma2 semaphore(%arg18 : memref<!tpu.dma_semaphore, #tpu.memory_space<semaphore_mem>>) src(%arg8 : memref<128x3xf32, #tpu.memory_space<any>>) dst(%alloca : memref<128x3xf32, #tpu.memory_space<vmem>>)
        %cst_21 = arith.constant -1.000000e+30 : f32
        %36 = vector.broadcast %cst_21 : f32 to vector<3x128xf32>
        %c0_i32_22 = arith.constant 0 : i32
        %c128_i32_23 = arith.constant 128 : i32
        %37 = arith.muli %c0_i32_22, %c128_i32_23 : i32
        %38 = tpu.assume_multiple %37, 128 : i32
        %39 = arith.index_cast %38 : i32 to index
        %c0_24 = arith.constant 0 : index
        %40 = vector.load %arg11[%39, %c0_24] : memref<128x128xbf16, #tpu.memory_space<vmem>>, vector<128x128xbf16>
        %41 = arith.extf %40 : vector<128x128xbf16> to vector<128x128xf32>
        %42 = arith.index_cast %38 : i32 to index
        %c0_25 = arith.constant 0 : index
        %43 = vector.load %alloca[%42, %c0_25] : memref<128x3xf32, #tpu.memory_space<vmem>>, vector<128x3xf32>
        %44 = vector.extract_strided_slice %43 {offsets = [0, 0], sizes = [128, 1], strides = [1, 1]} : vector<128x3xf32> to vector<128x1xf32>
        %cst_26 = arith.constant 0.000000e+00 : f32
        %45 = vector.broadcast %cst_26 : f32 to vector<128x1xf32>
        %46 = arith.cmpf ogt, %44, %45 : vector<128x1xf32>
        %cst_27 = arith.constant -1.000000e+30 : f32
        %47 = vector.shape_cast %46 : vector<128x1xi1> to vector<128x1xi1>
        %48 = vector.broadcast %47 : vector<128x1xi1> to vector<128x128xi1>
        %49 = vector.broadcast %cst_27 : f32 to vector<128x128xf32>
        %50 = arith.select %48, %41, %49 : vector<128x128xi1>, vector<128x128xf32>
        %cst_28 = arith.constant dense<0xFF800000> : vector<128xf32>
        %51 = vector.multi_reduction <maximumf>, %50, %cst_28 [0] : vector<128x128xf32> to vector<128xf32>
        %52 = vector.shape_cast %51 : vector<128xf32> to vector<1x128xf32>
        %53 = vector.extract_strided_slice %43 {offsets = [0, 1], sizes = [128, 1], strides = [1, 1]} : vector<128x3xf32> to vector<128x1xf32>
        %cst_29 = arith.constant 0.000000e+00 : f32
        %54 = vector.broadcast %cst_29 : f32 to vector<128x1xf32>
        %55 = arith.cmpf ogt, %53, %54 : vector<128x1xf32>
        %cst_30 = arith.constant -1.000000e+30 : f32
        %56 = vector.shape_cast %55 : vector<128x1xi1> to vector<128x1xi1>
        %57 = vector.broadcast %56 : vector<128x1xi1> to vector<128x128xi1>
        %58 = vector.broadcast %cst_30 : f32 to vector<128x128xf32>
        %59 = arith.select %57, %41, %58 : vector<128x128xi1>, vector<128x128xf32>
        %cst_31 = arith.constant dense<0xFF800000> : vector<128xf32>
        %60 = vector.multi_reduction <maximumf>, %59, %cst_31 [0] : vector<128x128xf32> to vector<128xf32>
        %61 = vector.shape_cast %60 : vector<128xf32> to vector<1x128xf32>
        %62 = vector.extract_strided_slice %43 {offsets = [0, 2], sizes = [128, 1], strides = [1, 1]} : vector<128x3xf32> to vector<128x1xf32>
        %cst_32 = arith.constant 0.000000e+00 : f32
        %63 = vector.broadcast %cst_32 : f32 to vector<128x1xf32>
        %64 = arith.cmpf ogt, %62, %63 : vector<128x1xf32>
        %cst_33 = arith.constant -1.000000e+30 : f32
        %65 = vector.shape_cast %64 : vector<128x1xi1> to vector<128x1xi1>
        %66 = vector.broadcast %65 : vector<128x1xi1> to vector<128x128xi1>
        %67 = vector.broadcast %cst_33 : f32 to vector<128x128xf32>
        %68 = arith.select %66, %41, %67 : vector<128x128xi1>, vector<128x128xf32>
        %cst_34 = arith.constant dense<0xFF800000> : vector<128xf32>
        %69 = vector.multi_reduction <maximumf>, %68, %cst_34 [0] : vector<128x128xf32> to vector<128xf32>
        %70 = vector.shape_cast %69 : vector<128xf32> to vector<1x128xf32>
        %71 = tpu.concatenate %52, %61, %70 in 0 : vector<1x128xf32>, vector<1x128xf32>, vector<1x128xf32> -> vector<3x128xf32>
        %72 = arith.maximumf %36, %71 : vector<3x128xf32>
        %c1_i32 = arith.constant 1 : i32
        %c0_35 = arith.constant 0 : index
        %c0_36 = arith.constant 0 : index
        %73 = vector.load %arg12[%c0_35, %c0_36] : memref<3x128xf32, #tpu.memory_space<vmem>>, vector<3x128xf32>
        tpu.vector_store %arg12[%c0_35, %c0_36], %72 {strides = array<i32>} : memref<3x128xf32, #tpu.memory_space<vmem>>, vector<3x128xf32>,
        %c0_37 = arith.constant 0 : index
        %c0_38 = arith.constant 0 : index
        %74 = vector.load %arg9[%c0_37, %c0_38] : memref<128x128xf32, #tpu.memory_space<vmem>>, vector<128x128xf32>
        %cst_39 = arith.constant dense<0.000000e+00> : vector<3x128xf32>
        %75 = tpu.matmul %72, %74, %cst_39 {dimension_numbers = #tpu.dot_dimension_numbers<[1], [0], [0], [1], [0, 0, 1, 1], [], []>} : vector<3x128xf32>, vector<128x128xf32>, vector<3x128xf32> -> vector<3x128xf32>
        %c0_40 = arith.constant 0 : index
        %c0_41 = arith.constant 0 : index
        %76 = vector.load %arg10[%c0_40, %c0_41] : memref<1x128xf32, #tpu.memory_space<vmem>>, vector<1x128xf32>
        %77 = vector.broadcast %76 : vector<1x128xf32> to vector<3x128xf32>
        %78 = arith.addf %75, %77 : vector<3x128xf32>
        %cst_42 = arith.constant dense<0xFF800000> : vector<3xf32>
        %79 = vector.multi_reduction <maximumf>, %78, %cst_42 [1] : vector<3x128xf32> to vector<3xf32>
        %80 = vector.shape_cast %79 : vector<3xf32> to vector<3x1xf32>
        %81 = vector.broadcast %80 : vector<3x1xf32> to vector<3x128xf32>
        %82 = arith.subf %78, %81 : vector<3x128xf32>
        %83 = math.exp %82 : vector<3x128xf32>
        %cst_43 = arith.constant dense<0.000000e+00> : vector<3xf32>
        %84 = vector.multi_reduction <add>, %83, %cst_43 [1] : vector<3x128xf32> to vector<3xf32>
        %85 = vector.shape_cast %84 : vector<3xf32> to vector<3x1xf32>
        %86 = math.log %85 : vector<3x1xf32>
        %87 = vector.broadcast %86 : vector<3x1xf32> to vector<3x128xf32>
        %88 = arith.subf %82, %87 : vector<3x128xf32>
        %c0_44 = arith.constant 0 : index
        %c0_45 = arith.constant 0 : index
        %89 = vector.load %arg14[%c0_44, %c0_45] : memref<3x128xf32, #tpu.memory_space<vmem>>, vector<3x128xf32>
        tpu.vector_store %arg14[%c0_44, %c0_45], %88 {strides = array<i32>} : memref<3x128xf32, #tpu.memory_space<vmem>>, vector<3x128xf32>,
        tpu.yield
      }) : () -> ()
    } else {
    }
    return
  }
  func.func @transform_1(%arg0: i32, %arg1: i32) -> (i32, i32) {
    %c0_i32 = arith.constant 0 : i32
    %c0_i32_0 = arith.constant 0 : i32
    %c0_i32_1 = arith.constant 0 : i32
    return %c0_i32, %c0_i32_0 : i32, i32
  }
  func.func @transform_2(%arg0: i32, %arg1: i32) -> (i32, i32, i32) {
    %c0_i32 = arith.constant 0 : i32
    %c0_i32_0 = arith.constant 0 : i32
    %c0_i32_1 = arith.constant 0 : i32
    return %arg0, %c0_i32, %c0_i32_0 : i32, i32, i32
  }
  func.func @transform_3(%arg0: i32, %arg1: i32) -> (i32, i32, i32) {
    %c0_i32 = arith.constant 0 : i32
    %c0_i32_0 = arith.constant 0 : i32
    %c0_i32_1 = arith.constant 0 : i32
    return %arg0, %c0_i32, %c0_i32_0 : i32, i32, i32
  }
  func.func @transform_4(%arg0: i32, %arg1: i32) -> (i32, i32, i32) {
    %c0_i32 = arith.constant 0 : i32
    %c0_i32_0 = arith.constant 0 : i32
    %c0_i32_1 = arith.constant 0 : i32
    return %arg0, %c0_i32, %c0_i32_0 : i32, i32, i32
  }
  func.func @transform_5(%arg0: i32, %arg1: i32) -> (i32, i32) {
    %c0_i32 = arith.constant 0 : i32
    %c0_i32_0 = arith.constant 0 : i32
    %c0_i32_1 = arith.constant 0 : i32
    return %c0_i32, %c0_i32_0 : i32, i32
  }
  func.func @transform_7(%arg0: i32, %arg1: i32) -> (i32, i32) {
    %c0_i32 = arith.constant 0 : i32
    %c0_i32_0 = arith.constant 0 : i32
    %c0_i32_1 = arith.constant 0 : i32
    return %c0_i32, %c0_i32_0 : i32, i32
  }
  func.func @transform_8(%arg0: i32, %arg1: i32) -> (i32, i32) {
    %c0_i32 = arith.constant 0 : i32
    %c0_i32_0 = arith.constant 0 : i32
    %c0_i32_1 = arith.constant 0 : i32
    return %c0_i32, %c0_i32_0 : i32, i32
  }
  func.func @transform_9(%arg0: i32, %arg1: i32) -> (i32, i32) {
    %c0_i32 = arith.constant 0 : i32
    %c0_i32_0 = arith.constant 0 : i32
    %c0_i32_1 = arith.constant 0 : i32
    return %c0_i32, %c0_i32_0 : i32, i32
  }
  func.func @transform_10(%arg0: i32, %arg1: i32) -> (i32, i32) {
    %c0_i32 = arith.constant 0 : i32
    %c0_i32_0 = arith.constant 0 : i32
    %c0_i32_1 = arith.constant 0 : i32
    return %c0_i32, %c0_i32_0 : i32, i32
  }
  func.func @transform_11(%arg0: i32, %arg1: i32) -> (i32, i32, i32) {
    %c0_i32 = arith.constant 0 : i32
    %c0_i32_0 = arith.constant 0 : i32
    %c0_i32_1 = arith.constant 0 : i32
    return %arg0, %c0_i32, %c0_i32_0 : i32, i32, i32
  }
  func.func @transform_12(%arg0: i32, %arg1: i32) -> (i32, i32) {
    %c0_i32 = arith.constant 0 : i32
    %c0_i32_0 = arith.constant 0 : i32
    %c0_i32_1 = arith.constant 0 : i32
    return %c0_i32, %c0_i32_0 : i32, i32
  }
}

</mosaic_0001>

<bundles_post_ra>
// kernel: gcn_forward.1
= control target key start
LH: loop header
LB: loop body
LE: loop exit
PB: predicated region body
PF: predicated region fallthrough
CT: control target
= control target key end

     0   :  { %s3285_s0 = inlined_call_operand.vmem [shape: bf16[128,128], index: 0, kind: input, shape index: {}]   ;;  %s3286_s1 = inlined_call_operand.vmem [shape: bf16[128,128], index: 1, kind: input, shape index: {}]   ;;  %s3287_s2 = inlined_call_operand.vmem [shape: bf16[3,128,128], index: 2, kind: input, shape index: {}]   ;;  %s3288_s3 = inlined_call_operand.vmem [shape: f32[3,1,128], index: 3, kind: input, shape index: {}]   ;;  %s3289_s4 = inlined_call_operand.vmem [shape: f32[3,1,128], index: 4, kind: input, shape index: {}]   ;;  %s3290_s5 = inlined_call_operand.vmem [shape: bf16[3,128], index: 5, kind: input, shape index: {}]   ;;  %s3291_s6 = inlined_call_operand.vmem [shape: f32[128,3], index: 6, kind: input, shape index: {}]   ;;  %s3292_s7 = inlined_call_operand.vmem [shape: f32[128,128], index: 7, kind: input, shape index: {}]   ;;  %s3293_s8 = inlined_call_operand.vmem [shape: f32[1,128], index: 8, kind: input, shape index: {}]   ;;  %s3294_s9 = inlined_call_operand.vmem [shape: bf16[128,128], index: 9, kind: output, shape index: {0}]   ;;  %s3295_s10 = inlined_call_operand.hbm [shape: f32[3,128], index: 10, kind: output, shape index: {1}]   ;;  %s3296_s11 = inlined_call_operand.hbm [shape: f32[3,3,128], index: 11, kind: output, shape index: {2}]   ;;  %s3297_s12 = inlined_call_operand.vmem [shape: f32[3,128], index: 12, kind: output, shape index: {3}]  }
   0x1   :  { %3309 = sst [smem:[#allocation25_spill]] %s3285_s0 }
   0x2   :  { %3310 = sst [smem:[#allocation26_spill]] %s3295_s10 }
   0x3   :  { %3311 = sst [smem:[#allocation27_spill]] %s3296_s11 }
   0x4   :  { %18 = vsyncpa [#allocation7], 0 }
   0x5   :  { %19 = vsyncpa [#allocation9], 0 }
   0x6   :  { %21 = vsyncpa [#allocation9 + $0x1], 0  ;;  %s2543_s21 = smov 0   ;;  %s2545_s22 = smov 0  }
   0x7   :  { %s2547_s23 = smov 0   ;;  %s2549_s24 = smov 0  }
   0x8   :  { %s2551_s25 = smov 0   ;;  %s2553_s26 = smov 0  }
   0x9 LB: > { %3312 = sst [smem:[#allocation17_spill]] %s2451_s21  ;;  %s1808_s27 = sadd.s32 4294967295, %s2471_s26   ;;  %s2471_s26 = sphi %s2553_s26, %s27_s26   ;;  %s2467_s25 = sphi %s2551_s25, %s3336_s25   ;;  %s2463_s24 = sphi %s2549_s24, %s3335_s24   ;;  %s2459_s23 = sphi %s2547_s23, %s3334_s23   ;;  %s2455_s22 = sphi %s2545_s22, %s3338_s22   ;;  %s2451_s21 = sphi %s2543_s21, %s3337_s21  }
   0xa   : > { %3313 = sst [smem:[#allocation18_spill]] %s2459_s23  ;;  %s1809_s28 = sadd.s32 4294967294, %s2471_s26  }
   0xb   : > { %3314 = sst [smem:[#allocation19_spill]] %s2467_s25  ;;  %s39_s29 = sadd.s32 1, %s2467_s25 }
   0xc   : > { %3315 = sst [smem:[#allocation20_spill]] %s2471_s26  ;;  %s250_s30 = sadd.s32 1, %s2459_s23 }
   0xd   : > { %p41_p0 = scmp.ge.s32.totalorder %s39_s29, 3  ;;  %p260_p1 = scmp.ne.s32.totalorder %s2459_s23, %s2455_s22 }
   0xe   : > { %p2579_p2 = scmp.eq.s32.totalorder %s1808_s27, 2  ;;  %p266_p3 = scmp.ne.s32.totalorder %s2455_s22, %s2451_s21 }
   0xf   : > { %s3340_s29 = smov (%p41_p0, %s39_s29), 0  ;;  %p267_p5 = scmp.eq.s32.totalorder %s1809_s28, 2 }
  0x10   : > { %3317 = sst [smem:[#allocation21_spill]] %s3340_s29  ;;  %p2589_p4 = por %p2579_p2, %p260_p1 }
  0x11   : > { %s247_s15 = ssub.s32 %s2467_s25, %s3340_s29  ;;  %p1812_p6 = scmp.ge.s32.totalorder %s2471_s26, 1 }
  0x12   : > { %s3318_s14 = scalar_select %p2589_p4, 1, 0 }
  0x13   : > { %p248_p7 = scmp.eq.s32.totalorder %s247_s15, 0  ;;  %p2596_p8 = por %p267_p5, %p266_p3 }
  0x14   : > { %3319 = sst [smem:[#allocation22_spill]] %s3318_s14  ;;  %p338_p9 = scmp.lt.s32.totalorder %s2471_s26, 4 }
  0x15   : > { %s3320_s16 = scalar_select %p2596_p8, 1, 0 }
  0x16   : > { %s2602_s17 = scalar_select %p248_p7, %s2459_s23, %s250_s30  }
  0x17   : > { %3321 = sst [smem:[#allocation23_spill]] %s3320_s16  ;;  %p339_p10 = pnand %p1812_p6, %p338_p9 }
  0x18   : > { %3322 = sst [smem:[#allocation24_spill]] %s2602_s17  ;;  %s3301_s18 = sand.u32 (!%p339_p10), 1, %s2455_s22  }
  0x19   : > { %342 = sbr.rel (%p339_p10) target bundleno = 1459 (0x5b3), region = 48  ;;  %p382_p11 = scmp.lt.s32.totalorder (!%p339_p10), %s2463_s24, 2 }
  0x1a   : > { %s2608_s19 = sshll.u32 (!%p339_p10), %s3301_s18, 2  ;;  %p393_p12 = scmp.eq.s32.totalorder (!%p339_p10), %s2463_s24, 0 }
  0x1e   : > { %s2612_s20 = scalar_select %p382_p11, %s2463_s24, 2 }
  0x1f   : > { %398 = sbr.rel (!%p393_p12) target bundleno = 49 (0x31), region = 52  ;;  %s3323_s0 = sld [smem:[#allocation25_spill]] (%p393_p12) }
  0x20   : > { %s1985_s27 = sshll.u32 %s2612_s20, 6  ;;  %s389_s15 = scalar_lea.vmem %s3288_s3, %s2612_s20 }
  0x21   : > { %s2622_s17 = scalar_lea.vmem %s3287_s2, %s1985_s27  ;;  %s392_s16 = scalar_lea.vmem %s3289_s4, %s2612_s20 }
  0x25   : > { %v409_v0 = vld [vmem:[%s3323_s0] sm:$0xff]  ;;  %v411_v1 = vld [vmem:[%s3323_s0 + $0x8] sm:$0xff]  ;;  %v413_v2 = vld [vmem:[%s3323_s0 + $0x10] sm:$0xff] }
  0x26   : > { %410 = vst [vmem:[%s3294_s9] sm:$0xff] %v409_v0  ;;  %v415_v3 = vld [vmem:[%s3323_s0 + $0x18] sm:$0xff]  ;;  %v417_v4 = vld [vmem:[%s3323_s0 + $0x20] sm:$0xff]  ;;  %v419_v5 = vld [vmem:[%s3323_s0 + $0x28] sm:$0xff] }
  0x27   : > { %412 = vst [vmem:[%s3294_s9 + $0x8] sm:$0xff] %v411_v1  ;;  %v421_v6 = vld [vmem:[%s3323_s0 + $0x30] sm:$0xff]  ;;  %v423_v7 = vld [vmem:[%s3323_s0 + $0x38] sm:$0xff] }
  0x28   : > { %414 = vst [vmem:[%s3294_s9 + $0x10] sm:$0xff] %v413_v2 }
  0x29   : > { %416 = vst [vmem:[%s3294_s9 + $0x18] sm:$0xff] %v415_v3 }
  0x2a   : > { %418 = vst [vmem:[%s3294_s9 + $0x20] sm:$0xff] %v417_v4 }
  0x2b   : > { %420 = vst [vmem:[%s3294_s9 + $0x28] sm:$0xff] %v419_v5 }
  0x2c   : > { %422 = vst [vmem:[%s3294_s9 + $0x30] sm:$0xff] %v421_v6 }
  0x2d   : > { %424 = vst [vmem:[%s3294_s9 + $0x38] sm:$0xff] %v423_v7 }
  0x2e   : > { %430 = vsyncadd [#allocation5], 1024 }
  0x2f   : > { %2437 = dma.done.wait [#allocation5], 1024 }
  0x30   : > { %2438 = vsyncadd [#allocation5], 4294966272 }
  0x31 PF: > { %v2002_v8 = vld [vmem:[%s2622_s17 + $0x38] sm:$0xff]  ;;  %v2001_v9 = vld [vmem:[%s2622_s17 + $0x30] sm:$0xff]  ;;  %v2000_v10 = vld [vmem:[%s2622_s17 + $0x28] sm:$0xff]  ;;  %p1152_p13 = scmp.eq.s32.totalorder %s2463_s24, 2 }
  0x32   : > { %568 = vmatpush.bf16.msra.mxu0 %v2002_v8  ;;  %2247 = vmatpush.bf16.msra.mxu3 %v2002_v8  ;;  %v1999_v11 = vld [vmem:[%s2622_s17 + $0x20] sm:$0xff]  ;;  %v1998_v12 = vld [vmem:[%s2622_s17 + $0x18] sm:$0xff]  ;;  %v1997_v13 = vld [vmem:[%s2622_s17 + $0x10] sm:$0xff] }
  0x33   : > { %v1996_v14 = vld [vmem:[%s2622_s17 + $0x8] sm:$0xff]  ;;  %v1995_v15 = vld [vmem:[%s2622_s17] sm:$0xff]  ;;  %v1993_v19 = vld [vmem:[%s3294_s9 + $0x30] sm:$0xff] }
  0x34   : > { %v1987_v16 = vld [vmem:[%s3294_s9] sm:$0xff]  ;;  %v1992_v17 = vld [vmem:[%s3294_s9 + $0x28] sm:$0xff]  ;;  %v1989_v20 = vld [vmem:[%s3294_s9 + $0x10] sm:$0xff] }
  0x35   : > { %v1988_v18 = vld [vmem:[%s3294_s9 + $0x8] sm:$0xff]  ;;  %v1994_v21 = vld [vmem:[%s3294_s9 + $0x38] sm:$0xff]  ;;  %v1991_v23 = vld [vmem:[%s3294_s9 + $0x20] sm:$0xff] }
  0x36   : > { %569 = vmatpush.bf16.msra.mxu0 %v2001_v9  ;;  %2248 = vmatpush.bf16.msra.mxu3 %v2001_v9  ;;  %v1990_v22 = vld [vmem:[%s3294_s9 + $0x18] sm:$0xff]  ;;  %v2003_v56 = vld [vmem:[%s3286_s1] sm:$0xff]  ;;  %v2008_v57 = vld [vmem:[%s3286_s1 + $0x28] sm:$0xff] }
  0x37   : > { %v2004_v58 = vld [vmem:[%s3286_s1 + $0x8] sm:$0xff]  ;;  %v2009_v59 = vld [vmem:[%s3286_s1 + $0x30] sm:$0xff]  ;;  %v2010_v61 = vld [vmem:[%s3286_s1 + $0x38] sm:$0xff] }
  0x38   : > { %v2005_v60 = vld [vmem:[%s3286_s1 + $0x10] sm:$0xff]  ;;  %v2006_v62 = vld [vmem:[%s3286_s1 + $0x18] sm:$0xff]  ;;  %v2007_v63 = vld [vmem:[%s3286_s1 + $0x20] sm:$0xff] }
  0x3a   : > { %570 = vmatpush.bf16.msra.mxu0 %v2000_v10  ;;  %2249 = vmatpush.bf16.msra.mxu3 %v2000_v10 }
  0x3e   : > { %571 = vmatpush.bf16.msra.mxu0 %v1999_v11  ;;  %2250 = vmatpush.bf16.msra.mxu3 %v1999_v11 }
  0x42   : > { %572 = vmatpush.bf16.msra.mxu0 %v1998_v12  ;;  %2251 = vmatpush.bf16.msra.mxu3 %v1998_v12 }
  0x46   : > { %573 = vmatpush.bf16.msra.mxu0 %v1997_v13  ;;  %2252 = vmatpush.bf16.msra.mxu3 %v1997_v13 }
  0x4a   : > { %574 = vmatpush.bf16.msra.mxu0 %v1996_v14  ;;  %2253 = vmatpush.bf16.msra.mxu3 %v1996_v14 }
  0x4e   : > { %575 = vmatpush.bf16.msra.mxu0 %v1995_v15  ;;  %2254 = vmatpush.bf16.msra.mxu3 %v1995_v15  ;;  %v2473_v15 = vmov 0.0  }
  0x4f   : > { %438 = vst [vmem:[#allocation3] sm:$0x1] %v2473_v15 }
  0x50   : > { %439 = vst [vmem:[#allocation4] sm:$0x1] %v2473_v15 }
  0x51   : > { %576 = vmatmul.bf16.vlgmr.msra.gmra.mxu0 %v1987_v16  ;;  %601 = vmatmul.bf16.vlgmr.msra.gmra.mxu3 %v1992_v17 }
  0x61   : > { %581 = vmatmul.bf16.gmra.mxu0 %v1988_v18  ;;  %606 = vmatmul.bf16.gmra.mxu3 %v1993_v19 }
  0x71   : > { %586 = vmatmul.bf16.gmra.mxu0 %v1989_v20  ;;  %611 = vmatmul.bf16.gmra.mxu3 %v1994_v21 }
  0x81   : > { %591 = vmatmul.bf16.gmra.mxu0 %v1990_v22 }
  0x91   : > { %596 = vmatmul.bf16.gmra.mxu0 %v1991_v23 }
  0xce   : > { %v577_v24 = vpop.f32.mrf.mxu0 }
  0xd4   : > { %v602_v25 = vpop.f32.mrf.mxu3 }
  0xd6   : > { %v579_v26 = vpop.f32.mrf.mxu0 }
  0xd7   : > { %v2031_v27 = vpack.c.bf16 %v579_v26, %v577_v24 }
  0xd9   : > { %2032 = vst [vmem:[#allocation2 + $0x30] sm:$0xff] %v2031_v27  }
  0xdc   : > { %v604_v28 = vpop.f32.mrf.mxu3 }
  0xdd   : > { %v2056_v29 = vpack.c.bf16 %v604_v28, %v602_v25 }
  0xde   : > { %v582_v30 = vpop.f32.mrf.mxu0 }
  0xdf   : > { %2216 = vst [vmem:[#allocation2 + $0x20] sm:$0xff] %v2056_v29  }
  0xe0   : > { %v2011_v55 = vld [vmem:[#allocation2 + $0x30] sm:$0xff] }
  0xe4   : > { %v607_v31 = vpop.f32.mrf.mxu3 }
  0xe6   : > { %v584_v32 = vpop.f32.mrf.mxu0  ;;  %v2016_v48 = vld [vmem:[#allocation2 + $0x20] sm:$0xff] }
  0xe7   : > { %v2036_v33 = vpack.c.bf16 %v584_v32, %v582_v30 }
  0xe9   : > { %2212 = vst [vmem:[#allocation2] sm:$0xff] %v2036_v33  }
  0xec   : > { %v609_v34 = vpop.f32.mrf.mxu3 }
  0xed   : > { %v2061_v35 = vpack.c.bf16 %v609_v34, %v607_v31 }
  0xee   : > { %v587_v36 = vpop.f32.mrf.mxu0 }
  0xef   : > { %2217 = vst [vmem:[#allocation2 + $0x28] sm:$0xff] %v2061_v35  }
  0xf0   : > { %v2012_v54 = vld [vmem:[#allocation2] sm:$0xff] }
  0xf4   : > { %v612_v37 = vpop.f32.mrf.mxu3 }
  0xf6   : > { %v589_v38 = vpop.f32.mrf.mxu0  ;;  %v2017_v46 = vld [vmem:[#allocation2 + $0x28] sm:$0xff] }
  0xf7   : > { %v2041_v39 = vpack.c.bf16 %v589_v38, %v587_v36 }
  0xf9   : > { %2213 = vst [vmem:[#allocation2 + $0x18] sm:$0xff] %v2041_v39  }
  0xfc   : > { %v614_v40 = vpop.f32.mrf.mxu3 }
  0xfd   : > { %v2066_v41 = vpack.c.bf16 %v614_v40, %v612_v37 }
  0xfe   : > { %v592_v42 = vpop.f32.mrf.mxu0 }
  0xff   : > { %2218 = vst [vmem:[#allocation2 + $0x38] sm:$0xff] %v2066_v41  }
 0x100   : > { %v2013_v53 = vld [vmem:[#allocation2 + $0x18] sm:$0xff] }
 0x106   : > { %v594_v43 = vpop.f32.mrf.mxu0  ;;  %v2018_v44 = vld [vmem:[#allocation2 + $0x38] sm:$0xff] }
 0x107   : > { %v2046_v45 = vpack.c.bf16 %v594_v43, %v592_v42  ;;  %782 = vmatpush.bf16.msra.mxu1 %v2018_v44  ;;  %2255 = vmatpush.bf16.msra.mxu2 %v2018_v44 }
 0x109   : > { %2214 = vst [vmem:[#allocation2 + $0x10] sm:$0xff] %v2046_v45  }
 0x10b   : > { %783 = vmatpush.bf16.msra.mxu1 %v2017_v46  ;;  %2256 = vmatpush.bf16.msra.mxu2 %v2017_v46 }
 0x10e   : > { %v597_v47 = vpop.f32.mrf.mxu0 }
 0x10f   : > { %784 = vmatpush.bf16.msra.mxu1 %v2016_v48  ;;  %2257 = vmatpush.bf16.msra.mxu2 %v2016_v48 }
 0x110   : > { %v2014_v52 = vld [vmem:[#allocation2 + $0x10] sm:$0xff] }
 0x116   : > { %v599_v49 = vpop.f32.mrf.mxu0 }
 0x117   : > { %v2051_v50 = vpack.c.bf16 %v599_v49, %v597_v47 }
 0x119   : > { %2215 = vst [vmem:[#allocation2 + $0x8] sm:$0xff] %v2051_v50  }
 0x120   : > { %v2015_v51 = vld [vmem:[#allocation2 + $0x8] sm:$0xff] }
 0x121   : > { %785 = vmatpush.bf16.msra.mxu1 %v2015_v51  ;;  %2258 = vmatpush.bf16.msra.mxu2 %v2015_v51 }
 0x125   : > { %786 = vmatpush.bf16.msra.mxu1 %v2014_v52  ;;  %2259 = vmatpush.bf16.msra.mxu2 %v2014_v52 }
 0x129   : > { %787 = vmatpush.bf16.msra.mxu1 %v2013_v53  ;;  %2260 = vmatpush.bf16.msra.mxu2 %v2013_v53 }
 0x12d   : > { %788 = vmatpush.bf16.msra.mxu1 %v2012_v54  ;;  %2261 = vmatpush.bf16.msra.mxu2 %v2012_v54 }
 0x131   : > { %789 = vmatpush.bf16.msra.mxu1 %v2011_v55  ;;  %2262 = vmatpush.bf16.msra.mxu2 %v2011_v55 }
 0x134   : > { %790 = vmatmul.bf16.vlgmr.msra.gmra.mxu1 %v2003_v56  ;;  %815 = vmatmul.bf16.vlgmr.msra.gmra.mxu2 %v2008_v57 }
 0x144   : > { %795 = vmatmul.bf16.gmra.mxu1 %v2004_v58  ;;  %820 = vmatmul.bf16.gmra.mxu2 %v2009_v59 }
 0x154   : > { %800 = vmatmul.bf16.gmra.mxu1 %v2005_v60  ;;  %825 = vmatmul.bf16.gmra.mxu2 %v2010_v61 }
 0x164   : > { %805 = vmatmul.bf16.gmra.mxu1 %v2006_v62 }
 0x174   : > { %810 = vmatmul.bf16.gmra.mxu1 %v2007_v63 }
 0x1b1   : > { %v791_v0 = vpop.f32.mrf.mxu1 }
 0x1b2   : > { %v856_v18 = vmul.f32 %v791_v0, %v791_v0 }
 0x1b7   : > { %v2733_v1 = vpop.f32.mrf.mxu2 }
 0x1b8   : > { %v866_v49 = vmul.f32 %v2733_v1, %v2733_v1 }
 0x1b9   : > { %v793_v2 = vpop.f32.mrf.mxu1 }
 0x1ba   : > { %v2735_v3 = vpack.c.bf16 %v793_v2, %v791_v0  ;;  %v857_v16 = vmul.f32 %v793_v2, %v793_v2  ;;  %v832_v19 = vadd.f32 %v793_v2, %v791_v0 }
 0x1bc   : > { %v872_v22 = vadd.f32 %v857_v16, %v856_v18 }
 0x1bf   : > { %v2737_v4 = vpop.f32.mrf.mxu2 }
 0x1c0   : > { %v867_v52 = vmul.f32 %v2737_v4, %v2737_v4 }
 0x1c1   : > { %v796_v5 = vpop.f32.mrf.mxu1 }
 0x1c2   : > { %v858_v20 = vmul.f32 %v796_v5, %v796_v5  ;;  %v833_v23 = vadd.f32 %v832_v19, %v796_v5 }
 0x1c4   : > { %v873_v25 = vadd.f32 %v872_v22, %v858_v20  ;;  %v831_v20 = vld [vmem:[#allocation3] sm:$0x1] }
 0x1c7   : > { %v821_v6 = vpop.f32.mrf.mxu2 }
 0x1c8   : > { %v868_v55 = vmul.f32 %v821_v6, %v821_v6 }
 0x1c9   : > { %v798_v7 = vpop.f32.mrf.mxu1 }
 0x1ca   : > { %v2739_v8 = vpack.c.bf16 %v798_v7, %v796_v5  ;;  %v859_v24 = vmul.f32 %v798_v7, %v798_v7  ;;  %v834_v26 = vadd.f32 %v833_v23, %v798_v7 }
 0x1cc   : > { %v874_v28 = vadd.f32 %v873_v25, %v859_v24  ;;  %v855_v24 = vld [vmem:[#allocation4] sm:$0x1] }
 0x1cf   : > { %v823_v9 = vpop.f32.mrf.mxu2 }
 0x1d0   : > { %v2741_v10 = vpack.c.bf16 %v823_v9, %v821_v6  ;;  %v869_v58 = vmul.f32 %v823_v9, %v823_v9 }
 0x1d1   : > { %v801_v11 = vpop.f32.mrf.mxu1 }
 0x1d2   : > { %v860_v27 = vmul.f32 %v801_v11, %v801_v11  ;;  %v835_v29 = vadd.f32 %v834_v26, %v801_v11 }
 0x1d4   : > { %v875_v32 = vadd.f32 %v874_v28, %v860_v27 }
 0x1d7   : > { %v2747_v43 = vpop.f32.mrf.mxu2 }
 0x1d8   : > { %v870_v62 = vmul.f32 %v2747_v43, %v2747_v43 }
 0x1d9   : > { %v803_v12 = vpop.f32.mrf.mxu1 }
 0x1da   : > { %v2743_v13 = vpack.c.bf16 %v803_v12, %v801_v11  ;;  %v861_v30 = vmul.f32 %v803_v12, %v803_v12  ;;  %v836_v33 = vadd.f32 %v835_v29, %v803_v12 }
 0x1dc   : > { %v876_v35 = vadd.f32 %v875_v32, %v861_v30 }
 0x1df   : > { %v828_v61 = vpop.f32.mrf.mxu2 }
 0x1e0   : > { %v871_v5 = vmul.f32 %v828_v61, %v828_v61 }
 0x1e1   : > { %v806_v14 = vpop.f32.mrf.mxu1 }
 0x1e2   : > { %v862_v34 = vmul.f32 %v806_v14, %v806_v14  ;;  %v837_v36 = vadd.f32 %v836_v33, %v806_v14 }
 0x1e4   : > { %v877_v38 = vadd.f32 %v876_v35, %v862_v34 }
 0x1e9   : > { %v808_v17 = vpop.f32.mrf.mxu1 }
 0x1ea   : > { %v2745_v21 = vpack.c.bf16 %v808_v17, %v806_v14  ;;  %v863_v37 = vmul.f32 %v808_v17, %v808_v17  ;;  %v838_v39 = vadd.f32 %v837_v36, %v808_v17 }
 0x1ec   : > { %v878_v41 = vadd.f32 %v877_v38, %v863_v37 }
 0x1f1   : > { %v811_v31 = vpop.f32.mrf.mxu1 }
 0x1f2   : > { %v864_v40 = vmul.f32 %v811_v31, %v811_v31  ;;  %v839_v42 = vadd.f32 %v838_v39, %v811_v31 }
 0x1f4   : > { %v879_v45 = vadd.f32 %v878_v41, %v864_v40  ;;  %v2096_v40 = vpack.c.bf16 %v2737_v4, %v2733_v1 }
 0x1f9   : > { %v813_v44 = vpop.f32.mrf.mxu1 }
 0x1fa   : > { %v840_v46 = vadd.f32 %v839_v42, %v813_v44  ;;  %v865_v47 = vmul.f32 %v813_v44, %v813_v44  ;;  %v2749_v48 = vpack.c.bf16 %v813_v44, %v811_v31  ;;  %v939_v42 = vld [vmem:[%s389_s15] sm:$0x1]  ;;  %s3324_s15 = scalar_lea.vmem [#allocation8], %s2608_s19 }
 0x1fc   : > { %v841_v50 = vadd.f32 %v840_v46, %v2733_v1  ;;  %v880_v51 = vadd.f32 %v879_v45, %v865_v47  ;;  %v2106_v45 = vpack.c.bf16 %v828_v61, %v2747_v43  ;;  %v2130_v47 = vunpack.c.l.bf16 %v2096_v40 }
 0x1fe   : > { %v842_v53 = vadd.f32 %v841_v50, %v2737_v4  ;;  %v881_v54 = vadd.f32 %v880_v51, %v866_v49  ;;  %v2110_v49 = vunpack.c.l.bf16 %v2735_v3  ;;  %v2111_v50 = vunpack.c.h.bf16 %v2735_v3 }
 0x1ff   : > { %v2131_v4 = vunpack.c.h.bf16 %v2096_v40  ;;  %v2114_v51 = vunpack.c.l.bf16 %v2739_v8 }
 0x200   : > { %v843_v56 = vadd.f32 %v842_v53, %v821_v6  ;;  %v882_v57 = vadd.f32 %v881_v54, %v867_v52  ;;  %v2115_v52 = vunpack.c.h.bf16 %v2739_v8  ;;  %v940_v53 = vld [vmem:[%s392_s16] sm:$0x1]  ;;  %v2135_v54 = vunpack.c.h.bf16 %v2741_v10 }
 0x201   : > { %v2127_v8 = vunpack.c.h.bf16 %v2749_v48 }
 0x202   : > { %v883_v59 = vadd.f32 %v882_v57, %v868_v55  ;;  %v844_v60 = vadd.f32 %v843_v56, %v823_v9  ;;  %v2118_v55 = vunpack.c.l.bf16 %v2743_v13  ;;  %v2119_v56 = vunpack.c.h.bf16 %v2743_v13 }
 0x204   : > { %v845_v63 = vadd.f32 %v844_v60, %v2747_v43  ;;  %v884_v0 = vadd.f32 %v883_v59, %v869_v58  ;;  %v2134_v43 = vunpack.c.l.bf16 %v2741_v10  ;;  %v2138_v58 = vunpack.c.l.bf16 %v2106_v45 }
 0x205   : > { %v2139_v59 = vunpack.c.h.bf16 %v2106_v45 }
 0x206   : > { %v846_v2 = vadd.f32 %v845_v63, %v828_v61  ;;  %v885_v7 = vadd.f32 %v884_v0, %v870_v62  ;;  %v2126_v61 = vunpack.c.l.bf16 %v2749_v48  ;;  %v2122_v62 = vunpack.c.l.bf16 %v2745_v21 }
 0x207   : > { %v2123_v63 = vunpack.c.h.bf16 %v2745_v21 }
 0x208   : > { %v847_v11 = vrot.slane %v846_v2, 4  ;;  %v886_v12 = vadd.f32 %v885_v7, %v871_v5 }
 0x20a   : > { %v848_v14 = vadd.f32 %v847_v11, %v846_v2  ;;  %v887_v15 = vrot.slane %v886_v12, 4 }
 0x20c   : > { %v849_v16 = vrot.slane %v848_v14, 2  ;;  %v888_v6 = vadd.f32 %v887_v15, %v886_v12 }
 0x20e   : > { %v850_v17 = vadd.f32 %v849_v16, %v848_v14  ;;  %v889_v18 = vrot.slane %v888_v6, 2 }
 0x210   : > { %v851_v19 = vrot.slane %v850_v17, 1  ;;  %v890_v9 = vadd.f32 %v889_v18, %v888_v6 }
 0x212   : > { %v852_v22 = vadd.f32 %v851_v19, %v850_v17  ;;  %v891_v23 = vrot.slane %v890_v9, 1 }
 0x214   : > { %v853_v25 = vadd.f32 %v852_v22, %v831_v20  ;;  %v892_v26 = vadd.f32 %v891_v23, %v890_v9 }
 0x216   : > { %854 = vst [vmem:[#allocation3] sm:$0x1] %v853_v25  ;;  %v893_v27 = vadd.f32 %v892_v26, %v855_v24 }
 0x218   : > { %894 = vst [vmem:[#allocation4] sm:$0x1] %v893_v27 }
 0x21d   : > { %v932_v28 = vld [vmem:[#allocation3] sm:$0x1] }
 0x21e   : > { %v933_v29 = vmul.f32 0.083333336, %v932_v28 }
 0x21f   : > { %v934_v30 = vld [vmem:[#allocation4] sm:$0x1] }
 0x220   : > { %v935_v31 = vmul.f32 0.083333336, %v934_v30  ;;  %v936_v32 = vmul.f32 %v933_v29, %v933_v29 }
 0x222   : > { %v937_v33 = vsub.f32 %v935_v31, %v936_v32 }
 0x224   : > { %v938_v34 = vmax.f32 %v937_v33, 0.0 }
 0x226   : > { %v941_v35 = vadd.f32 1e-05, %v938_v34 }
 0x228   : > { %2329 = vrsqrt.f32 %v941_v35  ;;  %vm948_vm1 = vweird.f32 %v941_v35 }
 0x22e   : > { %v2330_v36 = vpop.eup %2329 }
 0x22f   : > { %v943_v37 = vmul.f32 %v2330_v36, %v941_v35  ;;  %vm949_vm0 = vweird.f32 %v2330_v36 }
 0x230   : > { %vm950_vm2 = vmor %vm948_vm1, %vm949_vm0 }
 0x231   : > { %v944_v38 = vmul.f32 %v2330_v36, %v943_v37 }
 0x233   : > { %v945_v39 = vmul.f32 0.5, %v944_v38 }
 0x235   : > { %v946_v41 = vsub.f32 1.5, %v945_v39 }
 0x237   : > { %v947_v44 = vmul.f32 %v2330_v36, %v946_v41 }
 0x239   : > { %v951_v46 = vsel %vm950_vm2, %v2330_v36, %v947_v44 }
 0x23a   : > { %v952_v1 = vmul.f32 %v951_v46, %v939_v42 }
 0x23c   : > { %v953_v57 = vmul.f32 %v952_v1, %v933_v29  ;;  %v988_v60 = vperm.slane %v952_v1, 0 }
 0x23e   : > { %v954_v0 = vsub.f32 %v940_v53, %v953_v57  ;;  %v1004_v2 = vmul.f32 %v2138_v58, %v988_v60  ;;  %v1005_v5 = vmul.f32 %v2139_v59, %v988_v60  ;;  %v1002_v10 = vmul.f32 %v2134_v43, %v988_v60 }
 0x23f   : > { %v1003_v7 = vmul.f32 %v2135_v54, %v988_v60  ;;  %v1000_v11 = vmul.f32 %v2130_v47, %v988_v60  ;;  %v1001_v12 = vmul.f32 %v2131_v4, %v988_v60  ;;  %v998_v13 = vmul.f32 %v2126_v61, %v988_v60 }
 0x240   : > { %v1007_v14 = vperm.slane %v954_v0, 0  ;;  %v999_v15 = vmul.f32 %v2127_v8, %v988_v60  ;;  %v996_v16 = vmul.f32 %v2122_v62, %v988_v60  ;;  %v997_v6 = vmul.f32 %v2123_v63, %v988_v60 }
 0x241   : > { %v994_v17 = vmul.f32 %v2118_v55, %v988_v60  ;;  %v995_v18 = vmul.f32 %v2119_v56, %v988_v60  ;;  %v992_v19 = vmul.f32 %v2114_v51, %v988_v60  ;;  %v993_v48 = vmul.f32 %v2115_v52, %v988_v60 }
 0x242   : > { %v1023_v9 = vadd.f32 %v1007_v14, %v1004_v2  ;;  %v1024_v20 = vadd.f32 %v1007_v14, %v1005_v5  ;;  %v1021_v22 = vadd.f32 %v1007_v14, %v1002_v10  ;;  %v1022_v21 = vadd.f32 %v1007_v14, %v1003_v7  ;;  %v1073_v5 = vld [vmem:[%s3290_s5] sm:$0x3] }
 0x243   : > { %v1019_v23 = vadd.f32 %v1007_v14, %v1000_v11  ;;  %v1020_v24 = vadd.f32 %v1007_v14, %v1001_v12  ;;  %v1017_v25 = vadd.f32 %v1007_v14, %v998_v13  ;;  %v1018_v26 = vadd.f32 %v1007_v14, %v999_v15  ;;  %v1167_v11 = vld [vmem:[%s3291_s6] sm:$0xff] (%p1152_p13)  ;;  %v1169_v12 = vld [vmem:[%s3291_s6 + $0x8] sm:$0xff] (%p1152_p13)  ;;  %v1171_v13 = vld [vmem:[%s3291_s6 + $0x10] sm:$0xff] (%p1152_p13) }
 0x244   : > { %v1039_v27 = vmax.f32 %v1023_v9, 0.0  ;;  %v1040_v28 = vmax.f32 %v1024_v20, 0.0  ;;  %v1037_v29 = vmax.f32 %v1021_v22, 0.0  ;;  %v1038_v30 = vmax.f32 %v1022_v21, 0.0  ;;  %v1175_v15 = vld [vmem:[%s3291_s6 + $0x20] sm:$0xff] (%p1152_p13)  ;;  %v2881_v9 = vld [vmem:[%s3291_s6 + $0x58] sm:$0xff] (%p1152_p13) }
 0x245   : > { %v1035_v31 = vmax.f32 %v1019_v23, 0.0  ;;  %v1036_v32 = vmax.f32 %v1020_v24, 0.0  ;;  %v1033_v33 = vmax.f32 %v1017_v25, 0.0  ;;  %v1034_v34 = vmax.f32 %v1018_v26, 0.0  ;;  %v1191_v20 = vld [vmem:[%s3291_s6 + $0x60] sm:$0xff] (%p1152_p13)  ;;  %v2889_v22 = vld [vmem:[%s3291_s6 + $0x68] sm:$0xff] (%p1152_p13) }
 0x246   : > { %v2178_v35 = vpack.c.bf16 %v1040_v28, %v1039_v27  ;;  %v2173_v36 = vpack.c.bf16 %v1038_v30, %v1037_v29  ;;  %v1015_v37 = vadd.f32 %v1007_v14, %v996_v16  ;;  %v1016_v38 = vadd.f32 %v1007_v14, %v997_v6  ;;  %v1177_v16 = vld [vmem:[%s3291_s6 + $0x28] sm:$0xff] (%p1152_p13)  ;;  %v1179_v6 = vld [vmem:[%s3291_s6 + $0x30] sm:$0xff] (%p1152_p13)  ;;  %v2899_v23 = vld [vmem:[%s3291_s6 + $0x78] sm:$0xff] (%p1152_p13) }
 0x247   : > { %v2168_v39 = vpack.c.bf16 %v1036_v32, %v1035_v31  ;;  %v2163_v40 = vpack.c.bf16 %v1034_v34, %v1033_v33  ;;  %v1013_v41 = vadd.f32 %v1007_v14, %v994_v17  ;;  %v1014_v42 = vadd.f32 %v1007_v14, %v995_v18  ;;  %v1181_v17 = vld [vmem:[%s3291_s6 + $0x38] sm:$0xff] (%p1152_p13)  ;;  %v2870_v18 = vld [vmem:[%s3291_s6 + $0x40] sm:$0xff] (%p1152_p13)  ;;  %v2894_v21 = vld [vmem:[%s3291_s6 + $0x70] sm:$0xff] (%p1152_p13) }
 0x248   : > { %2239 = vst [vmem:[%s3294_s9 + $0x38] sm:$0xff] %v2178_v35   ;;  %v1031_v44 = vmax.f32 %v1015_v37, 0.0  ;;  %v1032_v45 = vmax.f32 %v1016_v38, 0.0  ;;  %v1011_v46 = vadd.f32 %v1007_v14, %v992_v19  ;;  %v1012_v47 = vadd.f32 %v1007_v14, %v993_v48  ;;  %v1185_v19 = vld [vmem:[%s3291_s6 + $0x48] sm:$0xff] (%p1152_p13)  ;;  %v1187_v48 = vld [vmem:[%s3291_s6 + $0x50] sm:$0xff] (%p1152_p13) }
 0x249   : > { %2238 = vst [vmem:[%s3294_s9 + $0x30] sm:$0xff] %v2173_v36   ;;  %v1029_v1 = vmax.f32 %v1013_v41, 0.0  ;;  %v1030_v4 = vmax.f32 %v1014_v42, 0.0  ;;  %v990_v51 = vmul.f32 %v2110_v49, %v988_v60  ;;  %v991_v52 = vmul.f32 %v2111_v50, %v988_v60 }
 0x24a   : > { %2237 = vst [vmem:[%s3294_s9 + $0x28] sm:$0xff] %v2168_v39   ;;  %v2158_v53 = vpack.c.bf16 %v1032_v45, %v1031_v44  ;;  %v1027_v43 = vmax.f32 %v1011_v46, 0.0  ;;  %v1028_v54 = vmax.f32 %v1012_v47, 0.0 }
 0x24b   : > { %2236 = vst [vmem:[%s3294_s9 + $0x20] sm:$0xff] %v2163_v40   ;;  %v2153_v55 = vpack.c.bf16 %v1030_v4, %v1029_v1  ;;  %v1009_v56 = vadd.f32 %v1007_v14, %v990_v51  ;;  %v1010_v57 = vadd.f32 %v1007_v14, %v991_v52  ;;  %v1173_v14 = vld [vmem:[%s3291_s6 + $0x18] sm:$0xff] (%p1152_p13) }
 0x24c   : > { %2235 = vst [vmem:[%s3294_s9 + $0x18] sm:$0xff] %v2158_v53   ;;  %v2148_v3 = vpack.c.bf16 %v1028_v54, %v1027_v43 }
 0x24d   : > { %2234 = vst [vmem:[%s3294_s9 + $0x10] sm:$0xff] %v2153_v55   ;;  %v1025_v49 = vmax.f32 %v1009_v56, 0.0  ;;  %v1026_v50 = vmax.f32 %v1010_v57, 0.0 }
 0x24e   : > { %2233 = vst [vmem:[%s3294_s9 + $0x8] sm:$0xff] %v2148_v3  }
 0x24f   : > { %v2026_v58 = vld [vmem:[%s3294_s9 + $0x38] sm:$0xff]  ;;  %v2143_v59 = vpack.c.bf16 %v1026_v50, %v1025_v49 }
 0x250   : > { %1138 = vmatpush.bf16.msrb.mxu2 %v2026_v58  ;;  %v2025_v60 = vld [vmem:[%s3294_s9 + $0x30] sm:$0xff] }
 0x251   : > { %2144 = vst [vmem:[%s3294_s9] sm:$0xff] %v2143_v59   ;;  %v2024_v61 = vld [vmem:[%s3294_s9 + $0x28] sm:$0xff] }
 0x252   : > { %v2023_v8 = vld [vmem:[%s3294_s9 + $0x20] sm:$0xff] }
 0x253   : > { %v2022_v62 = vld [vmem:[%s3294_s9 + $0x18] sm:$0xff] }
 0x254   : > { %1139 = vmatpush.bf16.msrb.mxu2 %v2025_v60  ;;  %v2021_v63 = vld [vmem:[%s3294_s9 + $0x10] sm:$0xff] }
 0x255   : > { %v2020_v0 = vld [vmem:[%s3294_s9 + $0x8] sm:$0xff] }
 0x258   : > { %1140 = vmatpush.bf16.msrb.mxu2 %v2024_v61  ;;  %v2019_v2 = vld [vmem:[%s3294_s9] sm:$0xff] }
 0x25c   : > { %1141 = vmatpush.bf16.msrb.mxu2 %v2023_v8 }
 0x260   : > { %1142 = vmatpush.bf16.msrb.mxu2 %v2022_v62 }
 0x264   : > { %1143 = vmatpush.bf16.msrb.mxu2 %v2021_v63 }
 0x268   : > { %1144 = vmatpush.bf16.msrb.mxu2 %v2020_v0 }
 0x26c   : > { %1145 = vmatpush.bf16.msrb.mxu2 %v2019_v2 }
 0x26f   : > { %1146 = vmatmul.bf16.vlgmr.msrb.gmra.mxu2 %v1073_v5 }
 0x2f2   : > { %v1147_v10 = vpop.f32.mrf.mxu2 }
 0x2f3   : > { %1151 = vst [vmem:[%s3324_s15] sm:$0x7] %v1147_v10 }
 0x2f6   : > { %1156 = sbr.rel (!%p1152_p13) target bundleno = 1435 (0x59b), region = 83 }
 0x2fa   : > { %v1149_v7 = vpop.f32.mrf.mxu2 }
 0x2fb   : > { %1204 = vsyncadd [#allocation5], 2048  ;;  %vm1260_vm3 = vcmp.gt.f32.partialorder %v1175_v15, 0.0  ;;  %vm1258_vm4 = vcmp.gt.f32.partialorder %v1171_v13, 0.0  ;;  %vm1256_vm5 = vcmp.gt.f32.partialorder %v1167_v11, 0.0 }
 0x2fc   : > { %2439 = dma.done.wait [#allocation5], 2048 }
 0x2fd   : > { %2440 = vsyncadd [#allocation5], 4294965248  ;;  %v2474_v24 = vmov 0   ;;  %vm1261_vm6 = vcmp.gt.f32.partialorder %v1177_v16, 0.0  ;;  %vm1259_vm7 = vcmp.gt.f32.partialorder %v1173_v14, 0.0  ;;  %vm1257_vm8 = vcmp.gt.f32.partialorder %v1169_v12, 0.0 }
 0x2fe   : > { %2333 = vset.pattern.permute.xlu2 %v2474_v24  ;;  %2332 = vset.pattern.permute.xlu1 %v2474_v24  ;;  %v1276_v25 = vsel %vm1260_vm3, 1, %v2474_v24  ;;  %v1274_v26 = vsel %vm1258_vm4, 1, %v2474_v24  ;;  %v1272_v27 = vsel %vm1256_vm5, 1, %v2474_v24  ;;  %v1277_v28 = vsel %vm1261_vm6, 1, %v2474_v24  ;;  %v2241_v45 = vld [vmem:[%s3294_s9 + $0x10] sm:$0xff]   ;;  %v2181_v46 = vld [vmem:[%s3294_s9] sm:$0xff]  }
 0x2ff   : > { %2331 = vset.pattern.permute.xlu0 %v2474_v24  ;;  %1301 = vperm.xlu2 %2333, %v1276_v25   ;;  %v1275_v29 = vsel %vm1259_vm7, 1, %v2474_v24  ;;  %v1273_v30 = vsel %vm1257_vm8, 1, %v2474_v24  ;;  %vm1263_vm9 = vcmp.gt.f32.partialorder %v1181_v17, 0.0  ;;  %vm1262_vm10 = vcmp.gt.f32.partialorder %v1179_v6, 0.0  ;;  %v2240_v59 = vld [vmem:[%s3294_s9 + $0x8] sm:$0xff]   ;;  %v2242_v62 = vld [vmem:[%s3294_s9 + $0x18] sm:$0xff]  }
 0x300   : > { %1295 = vperm.xlu1 %2332, %v1274_v26   ;;  %1289 = vperm.xlu0 %2331, %v1272_v27   ;;  %v1279_v31 = vsel %vm1263_vm9, 1, %v2474_v24  ;;  %v1278_v32 = vsel %vm1262_vm10, 1, %v2474_v24  ;;  %v2475_v33 = vmov 1   ;;  %vm1265_vm11 = vcmp.gt.f32.partialorder %v1185_v19, 0.0 }
 0x301   : > { %v1281_v34 = vsel %vm1265_vm11, 1, %v2474_v24  ;;  %v2476_v35 = vmov 2   ;;  %vm1266_vm12 = vcmp.gt.f32.partialorder %v1187_v48, 0.0  ;;  %vm1268_vm13 = vcmp.gt.f32.partialorder %v1191_v20, 0.0 }
 0x302   : > { %v1282_v36 = vsel %vm1266_vm12, 1, %v2474_v24  ;;  %v2920_v37 = vsel %vm1268_vm13, 1, %v2474_v24  ;;  %vm1264_vm14 = vcmp.gt.f32.partialorder %v2870_v18, 0.0  ;;  %vm1267_vm15 = vcmp.gt.f32.partialorder %v2881_v9, 0.0 }
 0x303   : > { %v1280_v38 = vsel %vm1264_vm14, 1, %v2474_v24  ;;  %v1283_v39 = vsel %vm1267_vm15, 1, %v2474_v24  ;;  %vm1269_vm0 = vcmp.gt.f32.partialorder %v2889_v22, 0.0  ;;  %v2947_v47 = vunpack.c.l.bf16 %v2241_v45 }
 0x304   : > { %v1285_v40 = vsel %vm1269_vm0, 1, %v2474_v24  ;;  %v2949_v1 = vunpack.c.l.bf16 %v2181_v46  ;;  %vm1270_vm2 = vcmp.gt.f32.partialorder %v2894_v21, 0.0  ;;  %vm1271_vm3 = vcmp.gt.f32.partialorder %v2899_v23, 0.0 }
 0x305   : > { %v1286_v43 = vsel %vm1270_vm2, 1, %v2474_v24  ;;  %v1287_v55 = vsel %vm1271_vm3, 1, %v2474_v24  ;;  %v2965_v57 = vunpack.c.h.bf16 %v2181_v46  ;;  %v2967_v3 = vunpack.c.h.bf16 %v2241_v45 }
 0x306   : > { %v2986_v63 = vunpack.c.l.bf16 %v2240_v59  ;;  %v2187_v0 = vunpack.c.h.bf16 %v2240_v59  ;;  %v2195_v2 = vunpack.c.h.bf16 %v2242_v62  ;;  %v2989_v5 = vunpack.c.l.bf16 %v2242_v62  ;;  %v2245_v59 = vld [vmem:[%s3294_s9 + $0x30] sm:$0xff]  }
 0x307   : > { %1304 = vperm.xlu2 %2333, %v1277_v28  }
 0x308   : > { %1298 = vperm.xlu1 %2332, %v1275_v29   ;;  %1292 = vperm.xlu0 %2331, %v1273_v30  }
 0x30f   : > { %2334 = vset.pattern.permute.xlu2 %v2475_v33 }
 0x310   : > { %1310 = vperm.xlu1 %2332, %v1279_v31   ;;  %1307 = vperm.xlu0 %2331, %v1278_v32  }
 0x311   : > { %1390 = vperm.xlu2 %2334, %v1272_v27  }
 0x318   : > { %2335 = vset.pattern.permute.xlu1 %v2475_v33  ;;  %1316 = vperm.xlu0 %2331, %v1281_v34  }
 0x319   : > { %1396 = vperm.xlu1 %2335, %v1274_v26   ;;  %1399 = vperm.xlu2 %2334, %v1275_v29  }
 0x320   : > { %2339 = vset.pattern.permute.xlu0 %v2475_v33 }
 0x321   : > { %1402 = vperm.xlu1 %2335, %v1276_v25   ;;  %1405 = vperm.xlu2 %2334, %v1277_v28  }
 0x322   : > { %1393 = vperm.xlu0 %2339, %v1273_v30  }
 0x329   : > { %1411 = vperm.xlu1 %2335, %v1279_v31   ;;  %2336 = vset.pattern.permute.xlu2 %v2476_v35 }
 0x32a   : > { %1408 = vperm.xlu0 %2339, %v1278_v32   ;;  %1491 = vperm.xlu2 %2336, %v1272_v27  }
 0x331   : > { %2337 = vset.pattern.permute.xlu1 %v2476_v35 }
 0x332   : > { %1420 = vperm.xlu0 %2339, %v1282_v36   ;;  %1497 = vperm.xlu1 %2337, %v1274_v26  }
 0x333   : > { %1500 = vperm.xlu2 %2336, %v1275_v29  }
 0x33a   : > { %1426 = vperm.xlu0 %2339, %v2920_v37   ;;  %1503 = vperm.xlu1 %2337, %v1276_v25  }
 0x33b   : > { %1506 = vperm.xlu2 %2336, %v1277_v28  }
 0x342   : > { %2347 = vset.pattern.permute.xlu0 %v2476_v35  ;;  %1512 = vperm.xlu1 %2337, %v1279_v31  }
 0x343   : > { %2338 = vset.pattern.permute.xlu2 %v2474_v24  ;;  %1494 = vperm.xlu0 %2347, %v1273_v30  }
 0x344   : > { %1313 = vperm.xlu2 %2338, %v1280_v38  }
 0x34a   : > { %2340 = vset.pattern.permute.xlu1 %v2474_v24 }
 0x34b   : > { %1509 = vperm.xlu0 %2347, %v1278_v32   ;;  %1319 = vperm.xlu1 %2340, %v1282_v36  }
 0x34c   : > { %1322 = vperm.xlu2 %2338, %v1283_v39  }
 0x353   : > { %1524 = vperm.xlu0 %2347, %v1283_v39   ;;  %2341 = vset.pattern.permute.xlu1 %v2475_v33 }
 0x354   : > { %2342 = vset.pattern.permute.xlu2 %v2475_v33  ;;  %1414 = vperm.xlu1 %2341, %v1280_v38  }
 0x355   : > { %1417 = vperm.xlu2 %2342, %v1281_v34  }
 0x359   : > { %v1302_v41 = vpop.permute.xlu2 %1301 }
 0x35a   : > { %vm1340_vm1 = vcmp.eq.s32.totalorder %v1302_v41, 1 }
 0x35b   : > { %1530 = vperm.xlu0 %2347, %v1285_v40   ;;  %v2954_v52 = vsel %vm1340_vm1, %v2947_v47, -1e+30 }
 0x35c   : > { %1423 = vperm.xlu1 %2341, %v1283_v39  }
 0x35d   : > { %2343 = vset.pattern.permute.xlu2 %v2476_v35 }
 0x35e   : > { %1515 = vperm.xlu2 %2343, %v1280_v38  }
 0x361   : > { %v1305_v42 = vpop.permute.xlu2 %1304 }
 0x362   : > { %vm1341_vm5 = vcmp.eq.s32.totalorder %v1305_v42, 1 }
 0x363   : > { %v2978_v61 = vsel %vm1341_vm5, %v2967_v3, -1e+30 }
 0x364   : > { %2344 = vset.pattern.permute.xlu1 %v2476_v35 }
 0x365   : > { %1518 = vperm.xlu1 %2344, %v1281_v34  }
 0x366   : > { %1521 = vperm.xlu2 %2343, %v1282_v36  }
 0x36b   : > { %v2936_v44 = vpop.permute.xlu2 %1390 }
 0x36c   : > { %vm1437_vm11 = vcmp.eq.s32.totalorder %v2936_v44, 1 }
 0x36d   : > { %2345 = vset.pattern.permute.xlu1 %v2474_v24  ;;  %v3014_v9 = vsel %vm1437_vm11, %v2949_v1, -1e+30 }
 0x36e   : > { %2346 = vset.pattern.permute.xlu2 %v2474_v24  ;;  %1325 = vperm.xlu1 %2345, %v2920_v37   ;;  %v2243_v24 = vld [vmem:[%s3294_s9 + $0x20] sm:$0xff]  }
 0x36f   : > { %1328 = vperm.xlu2 %2346, %v1285_v40   ;;  %v3027_v26 = vunpack.c.l.bf16 %v2243_v24  ;;  %v3082_v62 = vunpack.c.h.bf16 %v2243_v24  ;;  %v1610_v24 = vld [vmem:[%s3292_s7 + $0x68] sm:$0xff] }
 0x372   : > { %v1296_v4 = vpop.permute.xlu1 %1295  ;;  %v1290_v51 = vpop.permute.xlu0 %1289 }
 0x373   : > { %vm1336_vm4 = vcmp.eq.s32.totalorder %v1290_v51, 1  ;;  %v2956_v53 = vpop.permute.xlu2 %1399  ;;  %vm1338_vm7 = vcmp.eq.s32.totalorder %v1296_v4, 1 }
 0x374   : > { %v2960_v54 = vsel %vm1336_vm4, %v2949_v1, -1e+30  ;;  %v2992_v11 = vsel %vm1338_vm7, %v2986_v63, -1e+30  ;;  %vm1440_vm13 = vcmp.eq.s32.totalorder %v2956_v53, 1 }
 0x375   : > { %v1368_v56 = vmax.f32 %v2960_v54, %v2954_v52  ;;  %v3029_v27 = vsel %vm1440_vm13, %v2187_v0, -1e+30 }
 0x376   : > { %1331 = vperm.xlu1 %2345, %v1286_v43  }
 0x377   : > { %1334 = vperm.xlu2 %2346, %v1287_v55  }
 0x37a   : > { %v1299_v49 = vpop.permute.xlu1 %1298  ;;  %v1293_v50 = vpop.permute.xlu0 %1292 }
 0x37b   : > { %vm1337_vm6 = vcmp.eq.s32.totalorder %v1293_v50, 1  ;;  %v2969_v58 = vpop.permute.xlu2 %1405  ;;  %vm1339_vm8 = vcmp.eq.s32.totalorder %v1299_v49, 1 }
 0x37c   : > { %v2975_v60 = vsel %vm1337_vm6, %v2965_v57, -1e+30  ;;  %v2994_v12 = vsel %vm1339_vm8, %v2187_v0, -1e+30 }
 0x37d   : > { %v1369_v8 = vmax.f32 %v2975_v60, %v2978_v61 }
 0x37e   : > { %2348 = vset.pattern.permute.xlu1 %v2475_v33 }
 0x37f   : > { %2349 = vset.pattern.permute.xlu2 %v2475_v33  ;;  %1429 = vperm.xlu1 %2348, %v1285_v40  }
 0x380   : > { %1432 = vperm.xlu2 %2349, %v1286_v43  }
 0x382   : > { %v1311_v10 = vpop.permute.xlu1 %1310  ;;  %v1308_v7 = vpop.permute.xlu0 %1307 }
 0x383   : > { %vm1343_vm9 = vcmp.eq.s32.totalorder %v1311_v10, 1  ;;  %vm1342_vm10 = vcmp.eq.s32.totalorder %v1308_v7, 1  ;;  %v3090_v10 = vunpack.c.h.bf16 %v2245_v59 }
 0x384   : > { %v2996_v13 = vsel %vm1343_vm9, %v2195_v2, -1e+30  ;;  %v2999_v14 = vsel %vm1342_vm10, %v2989_v5, -1e+30  ;;  %v1492_v15 = vpop.permute.xlu2 %1491 }
 0x385   : > { %v1371_v16 = vmax.f32 %v2994_v12, %v2996_v13  ;;  %v1370_v6 = vmax.f32 %v2992_v11, %v2999_v14  ;;  %vm1538_vm0 = vcmp.eq.s32.totalorder %v1492_v15, 1  ;;  %v1604_v12 = vld [vmem:[%s3292_s7 + $0x38] sm:$0xff] }
 0x386   : > { %v3050_v38 = vsel %vm1538_vm0, %v2949_v1, -1e+30 }
 0x387   : > { %1435 = vperm.xlu1 %2348, %v1287_v55  }
 0x388   : > { %2350 = vset.pattern.permute.xlu2 %v2476_v35 }
 0x389   : > { %1527 = vperm.xlu2 %2350, %v2920_v37  }
 0x38a   : > { %v3009_v19 = vpop.permute.xlu0 %1316 }
 0x38b   : > { %v3007_v17 = vpop.permute.xlu1 %1396  ;;  %vm1345_vm5 = vcmp.eq.s32.totalorder %v3009_v19, 1 }
 0x38d   : > { %v1501_v18 = vpop.permute.xlu2 %1500 }
 0x38e   : > { %vm1541_vm2 = vcmp.eq.s32.totalorder %v1501_v18, 1  ;;  %v1611_v18 = vld [vmem:[%s3292_s7 + $0x70] sm:$0xff] }
 0x38f   : > { %2351 = vset.pattern.permute.xlu1 %v2476_v35  ;;  %v3059_v44 = vsel %vm1541_vm2, %v2187_v0, -1e+30 }
 0x390   : > { %1533 = vperm.xlu1 %2351, %v1286_v43  }
 0x391   : > { %1536 = vperm.xlu2 %2350, %v1287_v55  }
 0x393   : > { %v1403_v48 = vpop.permute.xlu1 %1402 }
 0x394   : > { %vm1441_vm12 = vcmp.eq.s32.totalorder %v1403_v48, 1  ;;  %v3021_v23 = vpop.permute.xlu0 %1393  ;;  %v1361_v48 = vsel %vm1345_vm5, %v3082_v62, -1e+30 }
 0x395   : > { %v3017_v20 = vsel %vm1441_vm12, %v2947_v47, -1e+30  ;;  %v1507_v22 = vpop.permute.xlu2 %1506 }
 0x396   : > { %v1469_v21 = vmax.f32 %v3014_v9, %v3017_v20  ;;  %vm1543_vm6 = vcmp.eq.s32.totalorder %v1507_v22, 1  ;;  %v1599_v9 = vld [vmem:[%s3292_s7 + $0x10] sm:$0xff] }
 0x397   : > { %v1559_v19 = vsel %vm1543_vm6, %v2967_v3, -1e+30 }
 0x39b   : > { %v1412_v25 = vpop.permute.xlu1 %1411 }
 0x39c   : > { %vm1444_vm14 = vcmp.eq.s32.totalorder %v1412_v25, 1  ;;  %v3041_v33 = vpop.permute.xlu0 %1408  ;;  %v3102_v25 = vunpack.c.l.bf16 %v2245_v59 }
 0x39d   : > { %v3031_v28 = vsel %vm1444_vm14, %v2195_v2, -1e+30  ;;  %vm1443_vm6 = vcmp.eq.s32.totalorder %v3041_v33, 1 }
 0x39e   : > { %v1472_v29 = vmax.f32 %v3029_v27, %v3031_v28  ;;  %v1314_v30 = vpop.permute.xlu2 %1313  ;;  %v1459_v33 = vsel %vm1443_vm6, %v2989_v5, -1e+30 }
 0x39f   : > { %vm1344_vm15 = vcmp.eq.s32.totalorder %v1314_v30, 1 }
 0x3a0   : > { %v1360_v31 = vsel %vm1344_vm15, %v3027_v26, -1e+30 }
 0x3a1   : > { %v3039_v32 = vmax.f32 %v1368_v56, %v1360_v31 }
 0x3a4   : > { %v3043_v34 = vpop.permute.xlu1 %1497  ;;  %v3047_v37 = vpop.permute.xlu0 %1420 }
 0x3a6   : > { %v3045_v35 = vpop.permute.xlu2 %1322 }
 0x3a7   : > { %vm1347_vm12 = vcmp.eq.s32.totalorder %v3045_v35, 1 }
 0x3ac   : > { %v1504_v36 = vpop.permute.xlu1 %1503  ;;  %v3063_v46 = vpop.permute.xlu0 %1426 }
 0x3ad   : > { %vm1542_vm1 = vcmp.eq.s32.totalorder %v1504_v36, 1  ;;  %vm1449_vm5 = vcmp.eq.s32.totalorder %v3063_v46, 1 }
 0x3ae   : > { %v3053_v39 = vsel %vm1542_vm1, %v2947_v47, -1e+30  ;;  %vm1438_vm1 = vcmp.eq.s32.totalorder %v3021_v23, 1 }
 0x3af   : > { %v1570_v40 = vmax.f32 %v3050_v38, %v3053_v39  ;;  %v3057_v41 = vpop.permute.xlu2 %1417  ;;  %v1454_v11 = vsel %vm1438_vm1, %v2965_v57, -1e+30 }
 0x3b4   : > { %v1513_v42 = vpop.permute.xlu1 %1512 }
 0x3b5   : > { %vm1545_vm3 = vcmp.eq.s32.totalorder %v1513_v42, 1  ;;  %v1495_v52 = vpop.permute.xlu0 %1494  ;;  %v1373_v42 = vmax.f32 %v1369_v8, %v1361_v48  ;;  %v1608_v48 = vld [vmem:[%s3292_s7 + $0x58] sm:$0xff] }
 0x3b6   : > { %v3061_v45 = vsel %vm1545_vm3, %v2195_v2, -1e+30  ;;  %vm1539_vm4 = vcmp.eq.s32.totalorder %v1495_v52, 1  ;;  %v1612_v2 = vld [vmem:[%s3292_s7 + $0x78] sm:$0xff]  ;;  %vm1442_vm3 = vcmp.eq.s32.totalorder %v2969_v58, 1 }
 0x3b7   : > { %v1573_v1 = vmax.f32 %v3059_v44, %v3061_v45  ;;  %1617 = vmatpush.msra.mxu0 %v1612_v2  ;;  %v1555_v7 = vsel %vm1539_vm4, %v2965_v57, -1e+30  ;;  %vm1446_vm4 = vcmp.eq.s32.totalorder %v3057_v41, 1  ;;  %v1458_v58 = vsel %vm1442_vm3, %v2967_v3, -1e+30  ;;  %v1601_v57 = vld [vmem:[%s3292_s7 + $0x20] sm:$0xff] }
 0x3b8   : > { %v1516_v4 = vpop.permute.xlu2 %1515  ;;  %v1571_v30 = vmax.f32 %v1555_v7, %v1559_v19  ;;  %v1462_v23 = vsel %vm1446_vm4, %v3082_v62, -1e+30  ;;  %v1600_v3 = vld [vmem:[%s3292_s7 + $0x18] sm:$0xff]  ;;  %vm1591_vm3 = vcmask 1040384   ;;  %vm1593_vm4 = vcmask 1041408  }
 0x3b9   : > { %vm1546_vm9 = vcmp.eq.s32.totalorder %v1516_v4, 1  ;;  %1618 = vmatpush.msra.mxu0 %v1611_v18  ;;  %v2244_v4 = vld [vmem:[%s3294_s9 + $0x28] sm:$0xff]  }
 0x3ba   : > { %v1562_v52 = vsel %vm1546_vm9, %v3027_v26, -1e+30  ;;  %v3118_v59 = vunpack.c.h.bf16 %v2244_v4  ;;  %v3129_v19 = vunpack.c.l.bf16 %v2244_v4  ;;  %vm1447_vm9 = vcmp.eq.s32.totalorder %v3047_v37, 1 }
 0x3bb   : > { %1619 = vmatpush.msra.mxu0 %v1610_v24 }
 0x3bd   : > { %v3067_v47 = vpop.permute.xlu1 %1319  ;;  %v3073_v54 = vpop.permute.xlu0 %1509 }
 0x3be   : > { %vm1346_vm13 = vcmp.eq.s32.totalorder %v3067_v47, 1 }
 0x3bf   : > { %v1362_v38 = vsel %vm1346_vm13, %v3129_v19, -1e+30 }
 0x3c0   : > { %v3069_v51 = vpop.permute.xlu2 %1521  ;;  %v1374_v47 = vmax.f32 %v1370_v6, %v1362_v38  ;;  %v1602_v6 = vld [vmem:[%s3292_s7 + $0x28] sm:$0xff] }
 0x3c5   : > { %v3077_v49 = vpop.permute.xlu0 %1524 }
 0x3c6   : > { %v3071_v53 = vpop.permute.xlu1 %1414 }
 0x3c7   : > { %vm1445_vm2 = vcmp.eq.s32.totalorder %v3071_v53, 1 }
 0x3c8   : > { %v1461_v13 = vsel %vm1445_vm2, %v3027_v26, -1e+30  ;;  %v1470_v26 = vmax.f32 %v1454_v11, %v1458_v58 }
 0x3c9   : > { %v1329_v43 = vpop.permute.xlu2 %1328  ;;  %v1473_v53 = vmax.f32 %v1469_v21, %v1461_v13 }
 0x3ca   : > { %vm1349_vm8 = vcmp.eq.s32.totalorder %v1329_v43, 1  ;;  %v2246_v43 = vld [vmem:[%s3294_s9 + $0x38] sm:$0xff]   ;;  %v1474_v46 = vmax.f32 %v1470_v26, %v1462_v23 }
 0x3cb   : > { %v1365_v31 = vsel %vm1349_vm8, %v3090_v10, -1e+30  ;;  %v3134_v24 = vunpack.c.h.bf16 %v2246_v43  ;;  %vm1439_vm8 = vcmp.eq.s32.totalorder %v3007_v17, 1 }
 0x3cc   : > { %v1377_v8 = vmax.f32 %v1373_v42, %v1365_v31  ;;  %v1363_v31 = vsel %vm1347_vm12, %v3118_v59, -1e+30  ;;  %v3150_v42 = vunpack.c.l.bf16 %v2246_v43  ;;  %v1455_v17 = vsel %vm1439_vm8, %v2986_v63, -1e+30 }
 0x3cd   : > { %v1531_v15 = vpop.permute.xlu0 %1530  ;;  %v1375_v35 = vmax.f32 %v1371_v16, %v1363_v31  ;;  %v1603_v16 = vld [vmem:[%s3292_s7 + $0x30] sm:$0xff]  ;;  %vm1544_vm12 = vcmp.eq.s32.totalorder %v3073_v54, 1 }
 0x3ce   : > { %v3075_v55 = vpop.permute.xlu1 %1423  ;;  %vm1551_vm10 = vcmp.eq.s32.totalorder %v1531_v15, 1  ;;  %v1560_v31 = vsel %vm1544_vm12, %v2989_v5, -1e+30 }
 0x3cf   : > { %v1567_v2 = vsel %vm1551_vm10, %v3090_v10, -1e+30  ;;  %vm1448_vm10 = vcmp.eq.s32.totalorder %v3075_v55, 1  ;;  %v1597_v55 = vld [vmem:[%s3292_s7] sm:$0xff] }
 0x3d0   : > { %v1464_v37 = vsel %vm1448_vm10, %v3118_v59, -1e+30 }
 0x3d1   : > { %v1335_v56 = vpop.permute.xlu2 %1334 }
 0x3d2   : > { %vm1351_vm15 = vcmp.eq.s32.totalorder %v1335_v56, 1  ;;  %v1606_v56 = vld [vmem:[%s3292_s7 + $0x48] sm:$0xff] }
 0x3d7   : > { %v1519_v50 = vpop.permute.xlu1 %1518 }
 0x3d8   : > { %vm1547_vm7 = vcmp.eq.s32.totalorder %v1519_v50, 1  ;;  %v1609_v50 = vld [vmem:[%s3292_s7 + $0x60] sm:$0xff] }
 0x3d9   : > { %v1563_v22 = vsel %vm1547_vm7, %v3082_v62, -1e+30  ;;  %1620 = vmatpush.msra.mxu0 %v1609_v50  ;;  %v1605_v50 = vld [vmem:[%s3292_s7 + $0x40] sm:$0xff] }
 0x3da   : > { %v3084_v0 = vpop.permute.xlu2 %1432  ;;  %v1575_v60 = vmax.f32 %v1571_v30, %v1563_v22  ;;  %v1574_v22 = vmax.f32 %v1570_v40, %v1562_v52 }
 0x3db   : > { %1621 = vmatpush.msra.mxu0 %v1608_v48 }
 0x3dc   : > { %v1579_v39 = vmax.f32 %v1575_v60, %v1567_v2 }
 0x3e0   : > { %v1326_v36 = vpop.permute.xlu1 %1325 }
 0x3e1   : > { %vm1348_vm11 = vcmp.eq.s32.totalorder %v1326_v36, 1  ;;  %v1367_v36 = vsel %vm1351_vm15, %v3134_v24, -1e+30  ;;  %vm1548_vm15 = vcmp.eq.s32.totalorder %v3069_v51, 1 }
 0x3e2   : > { %v1364_v61 = vsel %vm1348_vm11, %v3102_v25, -1e+30  ;;  %v1379_v60 = vmax.f32 %v1375_v35, %v1367_v36  ;;  %vm1451_vm11 = vcmp.eq.s32.totalorder %v3084_v0, 1  ;;  %v1476_v0 = vmax.f32 %v1472_v29, %v1464_v37 }
 0x3e3   : > { %v1376_v7 = vmax.f32 %v3039_v32, %v1364_v61  ;;  %v1528_v18 = vpop.permute.xlu2 %1527  ;;  %v1607_v32 = vld [vmem:[%s3292_s7 + $0x50] sm:$0xff]  ;;  %v1564_v29 = vsel %vm1548_vm15, %v3129_v19, -1e+30 }
 0x3e4   : > { %vm1550_vm14 = vcmp.eq.s32.totalorder %v1528_v18, 1  ;;  %1622 = vmatpush.msra.mxu0 %v1607_v32  ;;  %v1471_v18 = vmax.f32 %v1455_v17, %v1459_v33 }
 0x3e5   : > { %v1380_v15 = vmax.f32 %v1376_v7, %v1377_v8  ;;  %v1566_v30 = vsel %vm1550_vm14, %v3102_v25, -1e+30  ;;  %v1465_v8 = vsel %vm1449_vm5, %v3102_v25, -1e+30  ;;  %v1598_v25 = vld [vmem:[%s3292_s7 + $0x8] sm:$0xff]  ;;  %vm1540_vm14 = vcmp.eq.s32.totalorder %v3043_v34, 1 }
 0x3e6   : > { %v1578_v40 = vmax.f32 %v1574_v22, %v1566_v30  ;;  %1623 = vmatpush.msra.mxu0 %v1606_v56  ;;  %v1477_v20 = vmax.f32 %v1473_v53, %v1465_v8  ;;  %v1463_v7 = vsel %vm1447_vm9, %v3129_v19, -1e+30  ;;  %v1467_v22 = vsel %vm1451_vm11, %v3150_v42, -1e+30 }
 0x3e7   : > { %v1475_v30 = vmax.f32 %v1471_v18, %v1463_v7  ;;  %v1556_v56 = vsel %vm1540_vm14, %v2986_v63, -1e+30  ;;  %vm1637_vm5 = vcmask 1042432  }
 0x3e8   : > { %v3152_v4 = vmax.f32 %v1578_v40, %v1579_v39  ;;  %v1332_v52 = vpop.permute.xlu1 %1331  ;;  %1624 = vmatpush.msra.mxu0 %v1605_v50  ;;  %v1572_v28 = vmax.f32 %v1556_v56, %v1560_v31 }
 0x3e9   : > { %vm1350_vm0 = vcmp.eq.s32.totalorder %v1332_v52, 1  ;;  %v1479_v38 = vmax.f32 %v1475_v30, %v1467_v22 }
 0x3ea   : > { %v1366_v43 = vsel %vm1350_vm0, %v3150_v42, -1e+30  ;;  %1625 = vmatpush.msra.mxu0 %v1604_v12  ;;  %vm1549_vm0 = vcmp.eq.s32.totalorder %v3077_v49, 1  ;;  %v1576_v50 = vmax.f32 %v1572_v28, %v1564_v29 }
 0x3eb   : > { %v1378_v61 = vmax.f32 %v1374_v47, %v1366_v43  ;;  %v1537_v40 = vpop.permute.xlu2 %1536  ;;  %v1565_v34 = vsel %vm1549_vm0, %v3118_v59, -1e+30 }
 0x3ec   : > { %1626 = vmatpush.msra.mxu0 %v1603_v16  ;;  %vm1553_vm1 = vcmp.eq.s32.totalorder %v1537_v40, 1  ;;  %v1577_v51 = vmax.f32 %v1573_v1, %v1565_v34 }
 0x3ed   : > { %v1381_v14 = vmax.f32 %v1378_v61, %v1379_v60  ;;  %v1569_v5 = vsel %vm1553_vm1, %v3134_v24, -1e+30 }
 0x3ee   : > { %1627 = vmatpush.msra.mxu0 %v1602_v6  ;;  %v1581_v60 = vmax.f32 %v1577_v51, %v1569_v5 }
 0x3ef   : > { %v1382_v41 = vmax.f32 %v1380_v15, %v1381_v14 }
 0x3f0   : > { %1628 = vmatpush.msra.mxu0 %v1601_v57 }
 0x3f1   : > { %v1430_v2 = vpop.permute.xlu1 %1429  ;;  %v1383_v48 = vrot.slane %v1382_v41, 4 }
 0x3f2   : > { %vm1450_vm7 = vcmp.eq.s32.totalorder %v1430_v2, 1  ;;  %1629 = vmatpush.msra.mxu0 %v1600_v3 }
 0x3f3   : > { %v1466_v62 = vsel %vm1450_vm7, %v3090_v10, -1e+30  ;;  %v1384_v39 = vmax.f32 %v1382_v41, %v1383_v48 }
 0x3f4   : > { %v1478_v21 = vmax.f32 %v1474_v46, %v1466_v62  ;;  %1630 = vmatpush.msra.mxu0 %v1599_v9 }
 0x3f5   : > { %v1385_v36 = vrot.slane %v1384_v39, 2 }
 0x3f6   : > { %v1481_v10 = vmax.f32 %v1477_v20, %v1478_v21  ;;  %1631 = vmatpush.msra.mxu0 %v1598_v25 }
 0x3f7   : > { %v1386_v43 = vmax.f32 %v1384_v39, %v1385_v36 }
 0x3f8   : > { %1632 = vmatpush.msra.mxu0 %v1597_v55 }
 0x3f9   : > { %v1436_v15 = vpop.permute.xlu1 %1435  ;;  %v1387_v12 = vrot.slane %v1386_v43, 1 }
 0x3fa   : > { %vm1452_vm13 = vcmp.eq.s32.totalorder %v1436_v15, 1 }
 0x3fb   : > { %v1468_v32 = vsel %vm1452_vm13, %v3134_v24, -1e+30  ;;  %v1388_v16 = vmax.f32 %v1386_v43, %v1387_v12 }
 0x3fc   : > { %v1480_v54 = vmax.f32 %v1476_v0, %v1468_v32 }
 0x3fe   : > { %v1482_v27 = vmax.f32 %v1479_v38, %v1480_v54 }
 0x400   : > { %v1483_v52 = vmax.f32 %v1481_v10, %v1482_v27 }
 0x402   : > { %v1484_v35 = vrot.slane %v1483_v52, 4  ;;  %v1534_v47 = vpop.permute.xlu1 %1533 }
 0x403   : > { %vm1552_vm2 = vcmp.eq.s32.totalorder %v1534_v47, 1 }
 0x404   : > { %v1485_v63 = vmax.f32 %v1483_v52, %v1484_v35  ;;  %v1568_v49 = vsel %vm1552_vm2, %v3150_v42, -1e+30 }
 0x405   : > { %v1580_v19 = vmax.f32 %v1576_v50, %v1568_v49 }
 0x406   : > { %v1486_v61 = vrot.slane %v1485_v63, 2 }
 0x407   : > { %v1583_v59 = vmax.f32 %v1580_v19, %v1581_v60 }
 0x408   : > { %v1487_v11 = vmax.f32 %v1485_v63, %v1486_v61 }
 0x409   : > { %v1584_v24 = vmax.f32 %v3152_v4, %v1583_v59  ;;  %v2352_v4 = vld [vmem:[%s3293_s8] ss:$0 sm:$0xff] }
 0x40a   : > { %v1488_v13 = vrot.slane %v1487_v11, 1 }
 0x40b   : > { %v1585_v14 = vrot.slane %v1584_v24, 4 }
 0x40c   : > { %v1489_v6 = vmax.f32 %v1487_v11, %v1488_v13 }
 0x40d   : > { %v1586_v44 = vmax.f32 %v1584_v24, %v1585_v14 }
 0x40e   : > { %v1592_v45 = vsel %vm1591_vm3, %v1388_v16, %v1489_v6 }
 0x40f   : > { %v1587_v1 = vrot.slane %v1586_v44, 2 }
 0x411   : > { %v1588_v58 = vmax.f32 %v1586_v44, %v1587_v1 }
 0x413   : > { %v1589_v23 = vrot.slane %v1588_v58, 1 }
 0x415   : > { %v1590_v42 = vmax.f32 %v1588_v58, %v1589_v23 }
 0x417   : > { %v1594_v41 = vsel %vm1593_vm4, %v1592_v45, %v1590_v42 }
 0x418   : > { %v1595_v57 = vmax.f32 %v1594_v41, -1e+30 }
 0x41a   : > { %1596 = vst [vmem:[#allocation6] sm:$0x7] %v1595_v57  ;;  %1633 = vmatmul.f32.vlgmr.msra.gmra.mxu0 %v1595_v57 }
 0x497   : > { %v1634_v26 = vpop.f32.mrf.mxu0 }
 0x498   : > { %v1635_v53 = vadd.f32 %v2352_v4, %v1634_v26 }
 0x49a   : > { %v1638_v8 = vsel %vm1637_vm5, %v1635_v53, -inf }
 0x49b   : > { %1639 = vmax.xlane.f32.xlu1 %v1638_v8 }
 0x50e   : > { %v1640_v2 = vpop.xlane.xlu1 %1639 }
 0x50f   : > { %v1641_v3 = vsub.f32 %v1635_v53, %v1640_v2 }
 0x511   : > { %v1642_v46 = vmul.f32 1.442695, %v1641_v3 }
 0x513   : > { %2353 = vpow2.f32 %v1642_v46 }
 0x519   : > { %v2354_v62 = vpop.eup %2353 }
 0x51a   : > { %v1644_v9 = vsel %vm1637_vm5, %v2354_v62, 0.0 }
 0x51b   : > { %1645 = vadd.xlane.f32.xlu2 %v1644_v9 }
 0x58e   : > { %v1646_v20 = vpop.xlane.xlu2 %1645 }
 0x58f   : > { %2355 = vlog2.f32 %v1646_v20 }
 0x595   : > { %v2356_v21 = vpop.eup %2355 }
 0x596   : > { %v1648_v33 = vmul.f32 0.6931472, %v2356_v21 }
 0x598   : > { %v1649_v25 = vsub.f32 %v1641_v3, %v1648_v33 }
 0x59a   : > { %1650 = vst [vmem:[%s3297_s12] sm:$0x7] %v1649_v25 }
 0x59b PF: > { %s2477_s18 = smov [#allocation6]   ;;  %s3325_s26 = sld [smem:[#allocation26_spill]] }
 0x59c   : > { %s1665_s21 = sshll.u32 %s2477_s18, 4  ;;  %s1980_s17 = sshll.u32 %s2463_s24, 2  ;;  %s1666_s21 = int_to_ptr.vmem [resolvable:$true] %s1665_s21 }
 0x59d   : > { %s3327_s20 = sld [smem:[#allocation27_spill]]  ;;  %s3328_s30 = scalar_lea.vmem [#allocation8], %s2608_s19 }
 0x59e   : > { %s1679_s25 = sshll.u32 %s3328_s30, 4  ;;  %s3329_s23 = sand.u32 1, %s2455_s22   ;;  %s1680_s25 = int_to_ptr.vmem [resolvable:$true] %s1679_s25 }
 0x59f   : > { %s1652_s18 = scalar_lea.sflag [#allocation9], %s3329_s23 }
 0x5a1   : > { %s1667_s14 = sshll.u32 %s3325_s26, 4  ;;  %s1668_s14 = int_to_ptr.hbm [resolvable:$true] %s1667_s14 }
 0x5a2   : > { %2264 = dma.vmem_to_hbm [thread:$0]  (%p2579_p2), %s1666_s21, 64, %s1668_s14, [#allocation7]  }
 0x5a3   : > { %s1677_s15 = scalar_lea.hbm %s3327_s20, %s1980_s17  ;;  %s2405_s11 = scalar_lea.hbm %s3327_s20, 12 }
 0x5a4   : > { %s1681_s29 = sshll.u32 %s1677_s15, 4  ;;  %s1682_s29 = int_to_ptr.hbm [resolvable:$true] %s1681_s29 }
 0x5a5   : > { %s2399_s0 = sshra.s32 %s1682_s29, 4  ;;  %s2400_s0 = int_to_ptr.hbm [resolvable:$true] %s2399_s0 }
 0x5a6   : > { %s2401_s27 = scalar_lea.hbm %s2400_s0, 4  ;;  %p2406_p5 = scmp.lt.s32.totalorder %s2400_s0, %s3327_s20 }
 0x5a7   : > { %p2402_p0 = scmp.ne.s32.totalorder %s2400_s0, %s2401_s27  ;;  %p2407_p6 = scmp.lt.s32.totalorder %s2405_s11, %s2401_s27 }
 0x5a9   : > { %p2403_p1 = pnand %p2402_p0, %p2589_p4  ;;  %p2408_p7 = por %p2407_p6, %p2406_p5 }
 0x5ab   : > { %p2404_p3 = pneg %p2403_p1 }
 0x5ad   : > { %p2409_p9 = pnand %p2408_p7, %p2404_p3 }
 0x5af   : > { %2412 = shalt.err (!%p2409_p9)
}
 0x5b0   : > { %2265 = dma.vmem_to_hbm [thread:$0]  (%p2589_p4), %s1680_s25, 64, %s1682_s29, %s1652_s18  }
 0x5b1   : > { %2442 = dma.done.wait (%p2579_p2), [#allocation7], 64  }
 0x5b2   : > { %2444 = vsyncadd (%p2579_p2), [#allocation7], 4294967232 }
 0x5b3 PF: > { %s3330_s19 = sld [smem:[#allocation20_spill]] }
 0x5b4   : > { %s3331_s17 = sld [smem:[#allocation17_spill]] }
 0x5b9   : > { %p2275_p10 = scmp.ge.s32.totalorder %s3330_s19, 2 }
 0x5ba   : > { %s1707_s16 = sand.u32 1, %s3331_s17  }
 0x5bb   : > { %p2270_p11 = pnand %p2275_p10, %p2596_p8  ;;  %s1708_s0 = scalar_lea.sflag [#allocation9], %s1707_s16 }
 0x5bd   : > { %p2271_p12 = pneg %p2270_p11 }
 0x5bf   : > { %2446 = dma.done.wait (%p2271_p12), %s1708_s0, 64  }
 0x5c0   : > { %2448 = vsyncadd (%p2271_p12), %s1708_s0, 4294967232  ;;  %s27_s26 = sadd.s32 1, %s3330_s19   ;;  %s3333_s10 = sld [smem:[#allocation18_spill]] }
 0x5c1   : > { %p24_p4 = scmp.ge.s32.totalorder %s27_s26, 5   ;;  %s3334_s23 = sld [smem:[#allocation24_spill]] }
 0x5c2   : > { %s3335_s24 = sld [smem:[#allocation19_spill]]  ;;  %s3337_s21 = smov %s2455_s22 }
 0x5c3   : > { %s3336_s25 = sld [smem:[#allocation21_spill]]  ;;  %26 = sbr.rel (!%p24_p4) target bundleno = 9 (0x9), region = 179 }
 0x5c6   : > { %s3338_s22 = smov %s3333_s10 }
 0x5c8   :  { %1714 = vsyncpa [#allocation7], 1 }
 0x5c9   :  { %1716 = vsyncpa [#allocation7 + $0x1], 1 }
 0x5ca   :  { %1717 = vsyncpa [#allocation9], 1 }
 0x5cb   :  { %1719 = vsyncpa [#allocation9 + $0x1], 1 }
 0x5cc   :  { %1720 = vsyncmov [#allocation5] }
 0x5cf   :  { %s1721_s13 = vpop.sfrf %1720 }
 0x5d0   :  { %p1984_p2 = scmp.ne.s32.totalorder %s1721_s13, 0 }
 0x5d2   :  { %1725 = shalt.err (%p1984_p2)  }

</bundles_post_ra>
